<compile_context>
chip_gen: v6e
topology: v6e:2x2x1
jax: 0.10.0
libtpu: 0.0.40
codegen_flags: <defaults>
</compile_context>

<pallas_src>
import jax
import jax.numpy as jnp
from jax.experimental import pallas as pl
from jax.experimental.pallas import tpu as pltpu

IN_FEATS = 13 * 13      # 169 logical in/out features
HIDDEN = 511            # logical hidden units
IN_PAD = 256            # 169 padded up to a multiple of 128 lanes
HID_PAD = 512           # 511 padded up to a multiple of 128 lanes


def _round_up(n, m):
    return ((n + m - 1) // m) * m


def mlp0_kernel(x_ref, w1_ref, b1_ref, w2_ref, b2_ref, w3_ref, b3_ref, o_ref):
    # input_layer: Linear(169 -> 511), no activation.
    h = jnp.dot(x_ref[...], w1_ref[...],
                preferred_element_type=jnp.float32) + b1_ref[...]
    # median_layer: Linear(511 -> 511) + Tanh.
    h = jnp.tanh(jnp.dot(h, w2_ref[...],
                         preferred_element_type=jnp.float32) + b2_ref[...])
    # output_layer: Linear(511 -> 169), no activation.
    o_ref[...] = jnp.dot(h, w3_ref[...],
                         preferred_element_type=jnp.float32) + b3_ref[...]


def mlp0_forward(x, params):
    """x: (B, 13, 13) float32 -> (B, 13, 13) float32."""
    w1, b1, w2, b2, w3, b3 = params          # padded, lane-aligned shapes
    B = x.shape[0]

    # Flatten the 13x13 patch and zero-pad features 169 -> 256 (exact).
    x_flat = x.reshape(B, IN_FEATS)
    x_flat = jnp.pad(x_flat, ((0, 0), (0, IN_PAD - IN_FEATS)))

    # Batch tile: 256-row tiles for large B, sublane-aligned tile for small B.
    TM = 256 if B >= 256 else _round_up(max(B, 1), 8)
    B_pad = _round_up(B, TM)
    if B_pad != B:
        x_flat = jnp.pad(x_flat, ((0, B_pad - B), (0, 0)))
    grid = (B_pad // TM,)

    def resident(shape):
        # Constant block index -> DMA'd once, stays resident in VMEM.
        return pl.BlockSpec(shape, lambda i: (0, 0))

    cost = pl.CostEstimate(
        flops=2 * B_pad * (IN_PAD * HID_PAD + HID_PAD * HID_PAD + HID_PAD * IN_PAD),
        transcendentals=B_pad * HID_PAD,
        bytes_accessed=4 * (2 * B_pad * IN_PAD
                            + IN_PAD * HID_PAD + HID_PAD * HID_PAD
                            + HID_PAD * IN_PAD + 2 * HID_PAD + IN_PAD),
    )

    out_pad = pl.pallas_call(
        mlp0_kernel,
        out_shape=jax.ShapeDtypeStruct((B_pad, IN_PAD), jnp.float32),
        grid=grid,
        in_specs=[
            pl.BlockSpec((TM, IN_PAD), lambda i: (i, 0)),   # x batch tile
            resident((IN_PAD, HID_PAD)),                    # W1
            resident((1, HID_PAD)),                         # b1
            resident((HID_PAD, HID_PAD)),                   # W2
            resident((1, HID_PAD)),                         # b2
            resident((HID_PAD, IN_PAD)),                    # W3
            resident((1, IN_PAD)),                          # b3
        ],
        out_specs=pl.BlockSpec((TM, IN_PAD), lambda i: (i, 0)),
        compiler_params=pltpu.CompilerParams(
            dimension_semantics=("parallel",)),
        cost_estimate=cost,
    )(x_flat, w1, b1, w2, b2, w3, b3)

    return out_pad[:B, :IN_FEATS].reshape(B, 13, 13)


def init_params(key):
    """torch.nn.Linear-style init; weights stored transposed as (in, out) and
    zero-padded to lane-aligned shapes (padding rows/cols/biases are zero, so
    the padded math is exactly equal to the 169/511 math)."""
    def linear(k, fan_in, fan_out, pad_in, pad_out):
        kw, kb = jax.random.split(k)
        bound = 1.0 / jnp.sqrt(fan_in)   # torch.nn.Linear default init range
        w = jax.random.uniform(kw, (fan_in, fan_out), jnp.float32, -bound, bound)
        b = jax.random.uniform(kb, (fan_out,), jnp.float32, -bound, bound)
        w_pad = jnp.zeros((pad_in, pad_out), jnp.float32).at[:fan_in, :fan_out].set(w)
        b_pad = jnp.zeros((1, pad_out), jnp.float32).at[0, :fan_out].set(b)
        return w_pad, b_pad

    k1, k2, k3 = jax.random.split(key, 3)
    w1, b1 = linear(k1, IN_FEATS, HIDDEN, IN_PAD, HID_PAD)   # input_layer  Linear(169, 511)
    w2, b2 = linear(k2, HIDDEN, HIDDEN, HID_PAD, HID_PAD)    # median_layer Linear(511, 511)
    w3, b3 = linear(k3, HIDDEN, IN_FEATS, HID_PAD, IN_PAD)   # output_layer Linear(511, 169)
    return (w1, b1, w2, b2, w3, b3)


def mlp0_reference(x, params):
    """Pure-JAX reference using the UNPADDED 169/511 slices of the params."""
    w1, b1, w2, b2, w3, b3 = params
    B = x.shape[0]
    xf = x.reshape(B, IN_FEATS)
    h = xf @ w1[:IN_FEATS, :HIDDEN] + b1[0, :HIDDEN]
    h = jnp.tanh(h @ w2[:HIDDEN, :HIDDEN] + b2[0, :HIDDEN])
    y = h @ w3[:HIDDEN, :IN_FEATS] + b3[0, :IN_FEATS]
    return y.reshape(B, 13, 13)


if __name__ == "__main__":
    key = jax.random.PRNGKey(0)
    kx, kp = jax.random.split(key)

    B = 8
    x = jax.random.normal(kx, (B, 13, 13), jnp.float32)
    params = init_params(kp)

    y = mlp0_forward(x, params)
    y = jax.block_until_ready(y)

    y_ref = mlp0_reference(x, params)
    assert y.shape == (B, 13, 13)
    assert jnp.allclose(y, y_ref, atol=1e-4, rtol=1e-4)

    print("KERNEL_OK")
</pallas_src>

<mosaic_0001>
module attributes {stable_mosaic.version = 11 : i64} {
  func.func @mlp0_kernel(%arg0: i32, %arg1: memref<8x256xf32, #tpu.memory_space<vmem>>, %arg2: memref<256x512xf32, #tpu.memory_space<vmem>>, %arg3: memref<1x512xf32, #tpu.memory_space<vmem>>, %arg4: memref<512x512xf32, #tpu.memory_space<vmem>>, %arg5: memref<1x512xf32, #tpu.memory_space<vmem>>, %arg6: memref<512x256xf32, #tpu.memory_space<vmem>>, %arg7: memref<1x256xf32, #tpu.memory_space<vmem>>, %arg8: memref<8x256xf32, #tpu.memory_space<vmem>>) attributes {dimension_semantics = [#tpu.dimension_semantics<parallel>], iteration_bounds = array<i64: 1>, scalar_prefetch = 0 : i64, scratch_operands = 0 : i64, tpu.core_type = #tpu.core_type<tc>, window_params = [{transform_indices = @transform_0, window_bounds = array<i64: 8, 256>}, {pipeline_mode = #tpu.pipeline_mode<synchronous>, transform_indices = @transform_1, window_bounds = array<i64: 256, 512>}, {pipeline_mode = #tpu.pipeline_mode<synchronous>, transform_indices = @transform_2, window_bounds = array<i64: 1, 512>}, {pipeline_mode = #tpu.pipeline_mode<synchronous>, transform_indices = @transform_3, window_bounds = array<i64: 512, 512>}, {pipeline_mode = #tpu.pipeline_mode<synchronous>, transform_indices = @transform_4, window_bounds = array<i64: 1, 512>}, {pipeline_mode = #tpu.pipeline_mode<synchronous>, transform_indices = @transform_5, window_bounds = array<i64: 512, 256>}, {pipeline_mode = #tpu.pipeline_mode<synchronous>, transform_indices = @transform_6, window_bounds = array<i64: 1, 256>}, {transform_indices = @transform_7, window_bounds = array<i64: 8, 256>}]} {
    %c0 = arith.constant 0 : index
    %c0_0 = arith.constant 0 : index
    %0 = vector.load %arg1[%c0, %c0_0] : memref<8x256xf32, #tpu.memory_space<vmem>>, vector<8x256xf32>
    %c0_1 = arith.constant 0 : index
    %c0_2 = arith.constant 0 : index
    %1 = vector.load %arg2[%c0_1, %c0_2] : memref<256x512xf32, #tpu.memory_space<vmem>>, vector<256x512xf32>
    %cst = arith.constant dense<0.000000e+00> : vector<8x512xf32>
    %2 = tpu.matmul %0, %1, %cst {dimension_numbers = #tpu.dot_dimension_numbers<[1], [0], [0], [1], [0, 0, 1, 1], [], []>} : vector<8x256xf32>, vector<256x512xf32>, vector<8x512xf32> -> vector<8x512xf32>
    %c0_3 = arith.constant 0 : index
    %c0_4 = arith.constant 0 : index
    %3 = vector.load %arg3[%c0_3, %c0_4] : memref<1x512xf32, #tpu.memory_space<vmem>>, vector<1x512xf32>
    %4 = vector.broadcast %3 : vector<1x512xf32> to vector<8x512xf32>
    %5 = arith.addf %2, %4 : vector<8x512xf32>
    %c0_5 = arith.constant 0 : index
    %c0_6 = arith.constant 0 : index
    %6 = vector.load %arg4[%c0_5, %c0_6] : memref<512x512xf32, #tpu.memory_space<vmem>>, vector<512x512xf32>
    %cst_7 = arith.constant dense<0.000000e+00> : vector<8x512xf32>
    %7 = tpu.matmul %5, %6, %cst_7 {dimension_numbers = #tpu.dot_dimension_numbers<[1], [0], [0], [1], [0, 0, 1, 1], [], []>} : vector<8x512xf32>, vector<512x512xf32>, vector<8x512xf32> -> vector<8x512xf32>
    %c0_8 = arith.constant 0 : index
    %c0_9 = arith.constant 0 : index
    %8 = vector.load %arg5[%c0_8, %c0_9] : memref<1x512xf32, #tpu.memory_space<vmem>>, vector<1x512xf32>
    %9 = vector.broadcast %8 : vector<1x512xf32> to vector<8x512xf32>
    %10 = arith.addf %7, %9 : vector<8x512xf32>
    %11 = math.tanh %10 : vector<8x512xf32>
    %c0_10 = arith.constant 0 : index
    %c0_11 = arith.constant 0 : index
    %12 = vector.load %arg6[%c0_10, %c0_11] : memref<512x256xf32, #tpu.memory_space<vmem>>, vector<512x256xf32>
    %cst_12 = arith.constant dense<0.000000e+00> : vector<8x256xf32>
    %13 = tpu.matmul %11, %12, %cst_12 {dimension_numbers = #tpu.dot_dimension_numbers<[1], [0], [0], [1], [0, 0, 1, 1], [], []>} : vector<8x512xf32>, vector<512x256xf32>, vector<8x256xf32> -> vector<8x256xf32>
    %c0_13 = arith.constant 0 : index
    %c0_14 = arith.constant 0 : index
    %14 = vector.load %arg7[%c0_13, %c0_14] : memref<1x256xf32, #tpu.memory_space<vmem>>, vector<1x256xf32>
    %15 = vector.broadcast %14 : vector<1x256xf32> to vector<8x256xf32>
    %16 = arith.addf %13, %15 : vector<8x256xf32>
    %c0_15 = arith.constant 0 : index
    %c0_16 = arith.constant 0 : index
    %17 = vector.load %arg8[%c0_15, %c0_16] : memref<8x256xf32, #tpu.memory_space<vmem>>, vector<8x256xf32>
    tpu.vector_store %arg8[%c0_15, %c0_16], %16 {strides = array<i32>} : memref<8x256xf32, #tpu.memory_space<vmem>>, vector<8x256xf32>,
    return
  }
  func.func @transform_0(%arg0: i32) -> (i32, i32) {
    %c0_i32 = arith.constant 0 : i32
    %c0_i32_0 = arith.constant 0 : i32
    return %arg0, %c0_i32 : i32, i32
  }
  func.func @transform_1(%arg0: i32) -> (i32, i32) {
    %c0_i32 = arith.constant 0 : i32
    %c0_i32_0 = arith.constant 0 : i32
    %c0_i32_1 = arith.constant 0 : i32
    return %c0_i32, %c0_i32_0 : i32, i32
  }
  func.func @transform_2(%arg0: i32) -> (i32, i32) {
    %c0_i32 = arith.constant 0 : i32
    %c0_i32_0 = arith.constant 0 : i32
    %c0_i32_1 = arith.constant 0 : i32
    return %c0_i32, %c0_i32_0 : i32, i32
  }
  func.func @transform_3(%arg0: i32) -> (i32, i32) {
    %c0_i32 = arith.constant 0 : i32
    %c0_i32_0 = arith.constant 0 : i32
    %c0_i32_1 = arith.constant 0 : i32
    return %c0_i32, %c0_i32_0 : i32, i32
  }
  func.func @transform_4(%arg0: i32) -> (i32, i32) {
    %c0_i32 = arith.constant 0 : i32
    %c0_i32_0 = arith.constant 0 : i32
    %c0_i32_1 = arith.constant 0 : i32
    return %c0_i32, %c0_i32_0 : i32, i32
  }
  func.func @transform_5(%arg0: i32) -> (i32, i32) {
    %c0_i32 = arith.constant 0 : i32
    %c0_i32_0 = arith.constant 0 : i32
    %c0_i32_1 = arith.constant 0 : i32
    return %c0_i32, %c0_i32_0 : i32, i32
  }
  func.func @transform_6(%arg0: i32) -> (i32, i32) {
    %c0_i32 = arith.constant 0 : i32
    %c0_i32_0 = arith.constant 0 : i32
    %c0_i32_1 = arith.constant 0 : i32
    return %c0_i32, %c0_i32_0 : i32, i32
  }
  func.func @transform_7(%arg0: i32) -> (i32, i32) {
    %c0_i32 = arith.constant 0 : i32
    %c0_i32_0 = arith.constant 0 : i32
    return %arg0, %c0_i32 : i32, i32
  }
}

</mosaic_0001>

<bundles_post_ra>
// kernel: tpu_custom_call.1
= control target key start
LH: loop header
LB: loop body
LE: loop exit
PB: predicated region body
PF: predicated region fallthrough
CT: control target
= control target key end

     0   :  { %12 = vsyncpa [#allocation3], 0  ;;  %s1504_s0 = inlined_call_operand.hbm [shape: f32[8,256], index: 0, kind: input, shape index: {}]   ;;  %s1505_s1 = inlined_call_operand.hbm [shape: f32[256,512], index: 1, kind: input, shape index: {}]   ;;  %s1506_s2 = inlined_call_operand.hbm [shape: f32[1,512], index: 2, kind: input, shape index: {}]   ;;  %s1507_s3 = inlined_call_operand.hbm [shape: f32[512,512], index: 3, kind: input, shape index: {}]   ;;  %s1508_s4 = inlined_call_operand.vmem [shape: f32[1,512], index: 4, kind: input, shape index: {}]   ;;  %s1509_s5 = inlined_call_operand.hbm [shape: f32[512,256], index: 5, kind: input, shape index: {}]   ;;  %s1510_s6 = inlined_call_operand.vmem [shape: f32[1,256], index: 6, kind: input, shape index: {}]   ;;  %s1511_s7 = inlined_call_operand.hbm [shape: f32[8,256], index: 7, kind: output, shape index: {}]  }
   0x1   :  { %13 = vsyncpa [#allocation6], 0 }
   0x2   :  { %14 = vsyncpa [#allocation9], 0 }
   0x3   :  { %15 = vsyncpa [#allocation4], 0  ;;  %s1398_s24 = smov [#allocation5]  }
   0x4   :  { %s31_s25 = sshll.u32 %s1398_s24, 4  ;;  %s32_s25 = int_to_ptr.vmem [resolvable:$true] %s31_s25 }
   0x5   :  { %s1278_s26 = scalar_lea.vmem %s32_s25, 16384  ;;  %p1283_p1 = scmp.lt.s32.totalorder %s32_s25, %s32_s25 }
   0x6   :  { %p1279_p0 = scmp.ne.s32.totalorder %s32_s25, %s1278_s26  ;;  %p1284_p2 = scmp.lt.s32.totalorder %s1278_s26, %s1278_s26 }
   0x8   :  { %p1285_p3 = por %p1284_p2, %p1283_p1 }
   0xa   :  { %p1286_p4 = pnand %p1285_p3, %p1279_p0 }
   0xc   :  { %1289 = shalt.err (!%p1286_p4)
}
   0xd   :  { %s1399_s27 = smov 512   ;;  %s1400_s28 = smov 32  }
   0xe   :  { %37 = dma.hbm_to_vmem [thread:$0]  %s1505_s1, 16384, %s32_s25, [#allocation6], %s1399_s27, %s1399_s27, %s1400_s28  }
   0xf   :  { %s1401_s8 = smov [#allocation8]   ;;  %s1402_s10 = smov [#allocation2]  }
  0x10   :  { %s53_s9 = sshll.u32 %s1401_s8, 4  ;;  %s22_s11 = sshll.u32 %s1402_s10, 4  ;;  %s54_s9 = int_to_ptr.vmem [resolvable:$true] %s53_s9  ;;  %s23_s11 = int_to_ptr.vmem [resolvable:$true] %s22_s11 }
  0x11   :  { %s1298_s12 = scalar_lea.vmem %s54_s9, 32768  ;;  %p1303_p6 = scmp.lt.s32.totalorder %s54_s9, %s54_s9 }
  0x12   :  { %p1299_p5 = scmp.ne.s32.totalorder %s54_s9, %s1298_s12  ;;  %p1304_p7 = scmp.lt.s32.totalorder %s1298_s12, %s1298_s12 }
  0x14   :  { %p1305_p8 = por %p1304_p7, %p1303_p6 }
  0x16   :  { %p1306_p9 = pnand %p1305_p8, %p1299_p5 }
  0x18   :  { %1309 = shalt.err (!%p1306_p9)
}
  0x19   :  { %59 = dma.hbm_to_vmem [thread:$0]  %s1507_s3, 32768, %s54_s9, [#allocation9], %s1399_s27, %s1399_s27, %s1400_s28  }
  0x1a   :  { %s1318_s15 = scalar_lea.vmem %s23_s11, 256  ;;  %p1323_p11 = scmp.lt.s32.totalorder %s23_s11, %s23_s11 }
  0x1b   :  { %p1319_p10 = scmp.ne.s32.totalorder %s23_s11, %s1318_s15  ;;  %p1324_p12 = scmp.lt.s32.totalorder %s1318_s15, %s1318_s15 }
  0x1d   :  { %p1325_p13 = por %p1324_p12, %p1323_p11 }
  0x1f   :  { %p1326_p0 = pnand %p1325_p13, %p1319_p10 }
  0x21   :  { %1329 = shalt.err (!%p1326_p0)
}
  0x22   :  { %25 = dma.hbm_to_vmem [thread:$0]  %s1504_s0, 256, %s23_s11, [#allocation3]  }
  0x23   :  { %s1403_s17 = smov [#allocation7]   ;;  %s1404_s19 = smov [#allocation10]  }
  0x24   :  { %s44_s18 = sshll.u32 %s1403_s17, 4  ;;  %s67_s20 = sshll.u32 %s1404_s19, 4  ;;  %s45_s18 = int_to_ptr.vmem [resolvable:$true] %s44_s18  ;;  %s68_s20 = int_to_ptr.vmem [resolvable:$true] %s67_s20 }
  0x25   :  { %s1338_s21 = scalar_lea.vmem %s45_s18, 64  ;;  %p1343_p2 = scmp.lt.s32.totalorder %s45_s18, %s45_s18 }
  0x26   :  { %p1339_p1 = scmp.ne.s32.totalorder %s45_s18, %s1338_s21  ;;  %p1344_p3 = scmp.lt.s32.totalorder %s1338_s21, %s1338_s21 }
  0x28   :  { %p1345_p4 = por %p1344_p3, %p1343_p2 }
  0x2a   :  { %p1346_p5 = pnand %p1345_p4, %p1339_p1 }
  0x2c   :  { %1349 = shalt.err (!%p1346_p5)
}
  0x2d   :  { %47 = dma.hbm_to_vmem [thread:$0]  %s1506_s2, 64, %s45_s18, [#allocation6]  }
  0x2e   :  { %s1358_s23 = scalar_lea.vmem %s68_s20, 16384  ;;  %p1363_p7 = scmp.lt.s32.totalorder %s68_s20, %s68_s20 }
  0x2f   :  { %p1359_p6 = scmp.ne.s32.totalorder %s68_s20, %s1358_s23  ;;  %p1364_p8 = scmp.lt.s32.totalorder %s1358_s23, %s1358_s23 }
  0x31   :  { %p1365_p9 = por %p1364_p8, %p1363_p7 }
  0x33   :  { %p1366_p10 = pnand %p1365_p9, %p1359_p6 }
  0x35   :  { %1369 = shalt.err (!%p1366_p10)
}
  0x36   :  { %s1405_s0 = smov 256   ;;  %s1406_s24 = smov 16  }
  0x37   :  { %73 = dma.hbm_to_vmem [thread:$0]  %s1509_s5, 16384, %s68_s20, [#allocation9], %s1405_s0, %s1405_s0, %s1406_s24  }
  0x38   :  { %1390 = dma.done.wait [#allocation3], 256  }
  0x39   :  { %1391 = vsyncadd [#allocation3], 4294967040 }
  0x3a   :  { %1392 = dma.done.wait [#allocation6], 16448  }
  0x3b   :  { %1393 = vsyncadd [#allocation6], 4294950848 }
  0x3c   :  { %1394 = dma.done.wait [#allocation9], 49152  }
  0x3d   :  { %1395 = vsyncadd [#allocation9], 4294918144  ;;  %v154_v0 = vld [vmem:[#allocation5 + $0x1e8] sm:$0xff]  ;;  %v156_v1 = vld [vmem:[#allocation5 + $0x1f8] sm:$0xff]  ;;  %s1407_s28 = smov [#allocation11]  }
  0x3e   :  { %v153_v2 = vld [vmem:[#allocation5 + $0x1e0] sm:$0xff]  ;;  %243 = vmatprep.subr.mxu0 %v154_v0  ;;  %314 = vmatprep.subr.mxu1 %v156_v1  ;;  %v155_v3 = vld [vmem:[#allocation5 + $0x1f0] sm:$0xff]  ;;  %v150_v4 = vld [vmem:[#allocation5 + $0x1c8] sm:$0xff]  ;;  %s1241_s29 = sshll.u32 %s1407_s28, 4  ;;  %s1242_s29 = int_to_ptr.vmem [resolvable:$true] %s1241_s29 }
  0x3f   :  { %v152_v5 = vld [vmem:[#allocation5 + $0x1d8] sm:$0xff]  ;;  %244 = vmatpush1.msra.mxu0 %v153_v2  ;;  %315 = vmatpush1.msra.mxu1 %v155_v3  ;;  %v149_v6 = vld [vmem:[#allocation5 + $0x1c0] sm:$0xff]  ;;  %v151_v7 = vld [vmem:[#allocation5 + $0x1d0] sm:$0xff]  ;;  %s1370_s30 = scalar_lea.vmem %s1242_s29, 256  ;;  %p1375_p12 = scmp.lt.s32.totalorder %s1242_s29, %s1242_s29 }
  0x40   :  { %v146_v8 = vld [vmem:[#allocation5 + $0x1a8] sm:$0xff]  ;;  %245 = vmatprep.subr.mxu0 %v150_v4  ;;  %316 = vmatprep.subr.mxu1 %v152_v5  ;;  %v148_v9 = vld [vmem:[#allocation5 + $0x1b8] sm:$0xff]  ;;  %v145_v10 = vld [vmem:[#allocation5 + $0x1a0] sm:$0xff]  ;;  %p1371_p11 = scmp.ne.s32.totalorder %s1242_s29, %s1370_s30  ;;  %p1376_p13 = scmp.lt.s32.totalorder %s1370_s30, %s1370_s30 }
  0x41   :  { %v147_v11 = vld [vmem:[#allocation5 + $0x1b0] sm:$0xff]  ;;  %246 = vmatpush1.msra.mxu0 %v149_v6  ;;  %317 = vmatpush1.msra.mxu1 %v151_v7  ;;  %v142_v12 = vld [vmem:[#allocation5 + $0x188] sm:$0xff]  ;;  %v144_v13 = vld [vmem:[#allocation5 + $0x198] sm:$0xff] }
  0x42   :  { %247 = vmatprep.subr.mxu0 %v146_v8  ;;  %318 = vmatprep.subr.mxu1 %v148_v9  ;;  %v141_v14 = vld [vmem:[#allocation5 + $0x180] sm:$0xff]  ;;  %v143_v15 = vld [vmem:[#allocation5 + $0x190] sm:$0xff]  ;;  %v138_v16 = vld [vmem:[#allocation5 + $0x168] sm:$0xff]  ;;  %p1377_p0 = por %p1376_p13, %p1375_p12 }
  0x43   :  { %248 = vmatpush1.msra.mxu0 %v145_v10  ;;  %319 = vmatpush1.msra.mxu1 %v147_v11  ;;  %v140_v17 = vld [vmem:[#allocation5 + $0x178] sm:$0xff]  ;;  %v137_v18 = vld [vmem:[#allocation5 + $0x160] sm:$0xff]  ;;  %v139_v19 = vld [vmem:[#allocation5 + $0x170] sm:$0xff] }
  0x44   :  { %249 = vmatprep.subr.mxu0 %v142_v12  ;;  %320 = vmatprep.subr.mxu1 %v144_v13  ;;  %v134_v20 = vld [vmem:[#allocation5 + $0x148] sm:$0xff]  ;;  %v136_v21 = vld [vmem:[#allocation5 + $0x158] sm:$0xff]  ;;  %v133_v22 = vld [vmem:[#allocation5 + $0x140] sm:$0xff]  ;;  %p1378_p1 = pnand %p1377_p0, %p1371_p11 }
  0x45   :  { %250 = vmatpush1.msra.mxu0 %v141_v14  ;;  %321 = vmatpush1.msra.mxu1 %v143_v15  ;;  %v135_v23 = vld [vmem:[#allocation5 + $0x150] sm:$0xff]  ;;  %v130_v24 = vld [vmem:[#allocation5 + $0x128] sm:$0xff]  ;;  %v132_v25 = vld [vmem:[#allocation5 + $0x138] sm:$0xff] }
  0x46   :  { %251 = vmatprep.subr.mxu0 %v138_v16  ;;  %322 = vmatprep.subr.mxu1 %v140_v17  ;;  %v129_v26 = vld [vmem:[#allocation5 + $0x120] sm:$0xff]  ;;  %v131_v27 = vld [vmem:[#allocation5 + $0x130] sm:$0xff]  ;;  %v126_v28 = vld [vmem:[#allocation5 + $0x108] sm:$0xff] }
  0x47   :  { %252 = vmatpush1.msra.mxu0 %v137_v18  ;;  %323 = vmatpush1.msra.mxu1 %v139_v19  ;;  %v128_v29 = vld [vmem:[#allocation5 + $0x118] sm:$0xff]  ;;  %v125_v30 = vld [vmem:[#allocation5 + $0x100] sm:$0xff]  ;;  %v127_v31 = vld [vmem:[#allocation5 + $0x110] sm:$0xff] }
  0x48   :  { %253 = vmatprep.subr.mxu0 %v134_v20  ;;  %324 = vmatprep.subr.mxu1 %v136_v21  ;;  %v122_v32 = vld [vmem:[#allocation5 + $0xe8] sm:$0xff]  ;;  %v124_v33 = vld [vmem:[#allocation5 + $0xf8] sm:$0xff]  ;;  %v121_v34 = vld [vmem:[#allocation5 + $0xe0] sm:$0xff] }
  0x49   :  { %254 = vmatpush1.msra.mxu0 %v133_v22  ;;  %325 = vmatpush1.msra.mxu1 %v135_v23  ;;  %v123_v35 = vld [vmem:[#allocation5 + $0xf0] sm:$0xff]  ;;  %v118_v36 = vld [vmem:[#allocation5 + $0xc8] sm:$0xff]  ;;  %v120_v37 = vld [vmem:[#allocation5 + $0xd8] sm:$0xff] }
  0x4a   :  { %255 = vmatprep.subr.mxu0 %v130_v24  ;;  %326 = vmatprep.subr.mxu1 %v132_v25  ;;  %v117_v38 = vld [vmem:[#allocation5 + $0xc0] sm:$0xff]  ;;  %v119_v39 = vld [vmem:[#allocation5 + $0xd0] sm:$0xff]  ;;  %v114_v40 = vld [vmem:[#allocation5 + $0xa8] sm:$0xff] }
  0x4b   :  { %256 = vmatpush1.msra.mxu0 %v129_v26  ;;  %327 = vmatpush1.msra.mxu1 %v131_v27  ;;  %v116_v41 = vld [vmem:[#allocation5 + $0xb8] sm:$0xff]  ;;  %v113_v42 = vld [vmem:[#allocation5 + $0xa0] sm:$0xff]  ;;  %v115_v43 = vld [vmem:[#allocation5 + $0xb0] sm:$0xff] }
  0x4c   :  { %257 = vmatprep.subr.mxu0 %v126_v28  ;;  %328 = vmatprep.subr.mxu1 %v128_v29  ;;  %v110_v44 = vld [vmem:[#allocation5 + $0x88] sm:$0xff]  ;;  %v112_v45 = vld [vmem:[#allocation5 + $0x98] sm:$0xff]  ;;  %v109_v46 = vld [vmem:[#allocation5 + $0x80] sm:$0xff] }
  0x4d   :  { %258 = vmatpush1.msra.mxu0 %v125_v30  ;;  %329 = vmatpush1.msra.mxu1 %v127_v31  ;;  %v111_v47 = vld [vmem:[#allocation5 + $0x90] sm:$0xff]  ;;  %v106_v48 = vld [vmem:[#allocation5 + $0x68] sm:$0xff]  ;;  %v108_v49 = vld [vmem:[#allocation5 + $0x78] sm:$0xff] }
  0x4e   :  { %259 = vmatprep.subr.mxu0 %v122_v32  ;;  %330 = vmatprep.subr.mxu1 %v124_v33  ;;  %v105_v50 = vld [vmem:[#allocation5 + $0x60] sm:$0xff]  ;;  %v107_v51 = vld [vmem:[#allocation5 + $0x70] sm:$0xff]  ;;  %v102_v52 = vld [vmem:[#allocation5 + $0x48] sm:$0xff] }
  0x4f   :  { %260 = vmatpush1.msra.mxu0 %v121_v34  ;;  %331 = vmatpush1.msra.mxu1 %v123_v35  ;;  %v104_v53 = vld [vmem:[#allocation5 + $0x58] sm:$0xff]  ;;  %v101_v54 = vld [vmem:[#allocation5 + $0x40] sm:$0xff]  ;;  %v103_v55 = vld [vmem:[#allocation5 + $0x50] sm:$0xff] }
  0x50   :  { %261 = vmatprep.subr.mxu0 %v118_v36  ;;  %332 = vmatprep.subr.mxu1 %v120_v37  ;;  %v98_v56 = vld [vmem:[#allocation5 + $0x28] sm:$0xff]  ;;  %v100_v57 = vld [vmem:[#allocation5 + $0x38] sm:$0xff]  ;;  %v97_v58 = vld [vmem:[#allocation5 + $0x20] sm:$0xff] }
  0x51   :  { %262 = vmatpush1.msra.mxu0 %v117_v38  ;;  %333 = vmatpush1.msra.mxu1 %v119_v39  ;;  %v99_v59 = vld [vmem:[#allocation5 + $0x30] sm:$0xff]  ;;  %v94_v60 = vld [vmem:[#allocation5 + $0x8] sm:$0xff]  ;;  %v96_v61 = vld [vmem:[#allocation5 + $0x18] sm:$0xff] }
  0x52   :  { %263 = vmatprep.subr.mxu0 %v114_v40  ;;  %334 = vmatprep.subr.mxu1 %v116_v41  ;;  %v93_v62 = vld [vmem:[#allocation5] sm:$0xff]  ;;  %v95_v63 = vld [vmem:[#allocation5 + $0x10] sm:$0xff]  ;;  %v218_v0 = vld [vmem:[#allocation5 + $0x3e8] sm:$0xff] }
  0x53   :  { %264 = vmatpush1.msra.mxu0 %v113_v42  ;;  %335 = vmatpush1.msra.mxu1 %v115_v43  ;;  %v220_v1 = vld [vmem:[#allocation5 + $0x3f8] sm:$0xff]  ;;  %v217_v2 = vld [vmem:[#allocation5 + $0x3e0] sm:$0xff]  ;;  %v219_v3 = vld [vmem:[#allocation5 + $0x3f0] sm:$0xff] }
  0x54   :  { %265 = vmatprep.subr.mxu0 %v110_v44  ;;  %336 = vmatprep.subr.mxu1 %v112_v45  ;;  %v214_v4 = vld [vmem:[#allocation5 + $0x3c8] sm:$0xff]  ;;  %v216_v5 = vld [vmem:[#allocation5 + $0x3d8] sm:$0xff]  ;;  %v213_v6 = vld [vmem:[#allocation5 + $0x3c0] sm:$0xff] }
  0x55   :  { %266 = vmatpush1.msra.mxu0 %v109_v46  ;;  %337 = vmatpush1.msra.mxu1 %v111_v47  ;;  %v215_v7 = vld [vmem:[#allocation5 + $0x3d0] sm:$0xff]  ;;  %v210_v8 = vld [vmem:[#allocation5 + $0x3a8] sm:$0xff]  ;;  %v212_v9 = vld [vmem:[#allocation5 + $0x3b8] sm:$0xff] }
  0x56   :  { %267 = vmatprep.subr.mxu0 %v106_v48  ;;  %338 = vmatprep.subr.mxu1 %v108_v49  ;;  %v209_v10 = vld [vmem:[#allocation5 + $0x3a0] sm:$0xff]  ;;  %v211_v11 = vld [vmem:[#allocation5 + $0x3b0] sm:$0xff]  ;;  %v206_v12 = vld [vmem:[#allocation5 + $0x388] sm:$0xff] }
  0x57   :  { %268 = vmatpush1.msra.mxu0 %v105_v50  ;;  %339 = vmatpush1.msra.mxu1 %v107_v51  ;;  %v208_v13 = vld [vmem:[#allocation5 + $0x398] sm:$0xff]  ;;  %v205_v14 = vld [vmem:[#allocation5 + $0x380] sm:$0xff]  ;;  %v207_v15 = vld [vmem:[#allocation5 + $0x390] sm:$0xff] }
  0x58   :  { %269 = vmatprep.subr.mxu0 %v102_v52  ;;  %340 = vmatprep.subr.mxu1 %v104_v53  ;;  %v202_v16 = vld [vmem:[#allocation5 + $0x368] sm:$0xff]  ;;  %v204_v17 = vld [vmem:[#allocation5 + $0x378] sm:$0xff]  ;;  %v201_v18 = vld [vmem:[#allocation5 + $0x360] sm:$0xff] }
  0x59   :  { %270 = vmatpush1.msra.mxu0 %v101_v54  ;;  %341 = vmatpush1.msra.mxu1 %v103_v55  ;;  %v203_v19 = vld [vmem:[#allocation5 + $0x370] sm:$0xff]  ;;  %v198_v20 = vld [vmem:[#allocation5 + $0x348] sm:$0xff]  ;;  %v200_v21 = vld [vmem:[#allocation5 + $0x358] sm:$0xff] }
  0x5a   :  { %271 = vmatprep.subr.mxu0 %v98_v56  ;;  %342 = vmatprep.subr.mxu1 %v100_v57  ;;  %v197_v22 = vld [vmem:[#allocation5 + $0x340] sm:$0xff]  ;;  %v199_v23 = vld [vmem:[#allocation5 + $0x350] sm:$0xff]  ;;  %v194_v24 = vld [vmem:[#allocation5 + $0x328] sm:$0xff] }
  0x5b   :  { %272 = vmatpush1.msra.mxu0 %v97_v58  ;;  %343 = vmatpush1.msra.mxu1 %v99_v59  ;;  %v196_v25 = vld [vmem:[#allocation5 + $0x338] sm:$0xff]  ;;  %v193_v26 = vld [vmem:[#allocation5 + $0x320] sm:$0xff]  ;;  %v195_v27 = vld [vmem:[#allocation5 + $0x330] sm:$0xff] }
  0x5c   :  { %273 = vmatprep.subr.mxu0 %v94_v60  ;;  %344 = vmatprep.subr.mxu1 %v96_v61  ;;  %v190_v28 = vld [vmem:[#allocation5 + $0x308] sm:$0xff]  ;;  %v192_v29 = vld [vmem:[#allocation5 + $0x318] sm:$0xff]  ;;  %v189_v30 = vld [vmem:[#allocation5 + $0x300] sm:$0xff] }
  0x5d   :  { %274 = vmatpush1.msra.mxu0 %v93_v62  ;;  %345 = vmatpush1.msra.mxu1 %v95_v63  ;;  %v191_v31 = vld [vmem:[#allocation5 + $0x310] sm:$0xff]  ;;  %v186_v32 = vld [vmem:[#allocation5 + $0x2e8] sm:$0xff]  ;;  %v188_v33 = vld [vmem:[#allocation5 + $0x2f8] sm:$0xff] }
  0x5e   :  { %275 = vmatprep.subr.mxu0 %v218_v0  ;;  %346 = vmatprep.subr.mxu1 %v220_v1  ;;  %v185_v34 = vld [vmem:[#allocation5 + $0x2e0] sm:$0xff]  ;;  %v187_v35 = vld [vmem:[#allocation5 + $0x2f0] sm:$0xff]  ;;  %v182_v36 = vld [vmem:[#allocation5 + $0x2c8] sm:$0xff] }
  0x5f   :  { %276 = vmatpush2.msra.mxu0 %v217_v2  ;;  %347 = vmatpush2.msra.mxu1 %v219_v3  ;;  %v184_v37 = vld [vmem:[#allocation5 + $0x2d8] sm:$0xff]  ;;  %v181_v38 = vld [vmem:[#allocation5 + $0x2c0] sm:$0xff]  ;;  %v183_v39 = vld [vmem:[#allocation5 + $0x2d0] sm:$0xff] }
  0x60   :  { %277 = vmatprep.subr.mxu0 %v214_v4  ;;  %348 = vmatprep.subr.mxu1 %v216_v5  ;;  %v178_v40 = vld [vmem:[#allocation5 + $0x2a8] sm:$0xff]  ;;  %v180_v41 = vld [vmem:[#allocation5 + $0x2b8] sm:$0xff]  ;;  %v177_v42 = vld [vmem:[#allocation5 + $0x2a0] sm:$0xff] }
  0x61   :  { %278 = vmatpush2.msra.mxu0 %v213_v6  ;;  %349 = vmatpush2.msra.mxu1 %v215_v7  ;;  %v179_v43 = vld [vmem:[#allocation5 + $0x2b0] sm:$0xff]  ;;  %v174_v44 = vld [vmem:[#allocation5 + $0x288] sm:$0xff]  ;;  %v176_v45 = vld [vmem:[#allocation5 + $0x298] sm:$0xff] }
  0x62   :  { %279 = vmatprep.subr.mxu0 %v210_v8  ;;  %350 = vmatprep.subr.mxu1 %v212_v9  ;;  %v173_v46 = vld [vmem:[#allocation5 + $0x280] sm:$0xff]  ;;  %v175_v47 = vld [vmem:[#allocation5 + $0x290] sm:$0xff]  ;;  %v170_v48 = vld [vmem:[#allocation5 + $0x268] sm:$0xff] }
  0x63   :  { %280 = vmatpush2.msra.mxu0 %v209_v10  ;;  %351 = vmatpush2.msra.mxu1 %v211_v11  ;;  %v172_v49 = vld [vmem:[#allocation5 + $0x278] sm:$0xff]  ;;  %v169_v50 = vld [vmem:[#allocation5 + $0x260] sm:$0xff]  ;;  %v171_v51 = vld [vmem:[#allocation5 + $0x270] sm:$0xff] }
  0x64   :  { %281 = vmatprep.subr.mxu0 %v206_v12  ;;  %352 = vmatprep.subr.mxu1 %v208_v13  ;;  %v166_v52 = vld [vmem:[#allocation5 + $0x248] sm:$0xff]  ;;  %v168_v53 = vld [vmem:[#allocation5 + $0x258] sm:$0xff]  ;;  %v165_v54 = vld [vmem:[#allocation5 + $0x240] sm:$0xff] }
  0x65   :  { %282 = vmatpush2.msra.mxu0 %v205_v14  ;;  %353 = vmatpush2.msra.mxu1 %v207_v15  ;;  %v167_v55 = vld [vmem:[#allocation5 + $0x250] sm:$0xff]  ;;  %v162_v56 = vld [vmem:[#allocation5 + $0x228] sm:$0xff]  ;;  %v164_v57 = vld [vmem:[#allocation5 + $0x238] sm:$0xff] }
  0x66   :  { %283 = vmatprep.subr.mxu0 %v202_v16  ;;  %354 = vmatprep.subr.mxu1 %v204_v17  ;;  %v161_v58 = vld [vmem:[#allocation5 + $0x220] sm:$0xff]  ;;  %v163_v59 = vld [vmem:[#allocation5 + $0x230] sm:$0xff]  ;;  %v158_v60 = vld [vmem:[#allocation5 + $0x208] sm:$0xff] }
  0x67   :  { %284 = vmatpush2.msra.mxu0 %v201_v18  ;;  %355 = vmatpush2.msra.mxu1 %v203_v19  ;;  %v160_v61 = vld [vmem:[#allocation5 + $0x218] sm:$0xff]  ;;  %v157_v62 = vld [vmem:[#allocation5 + $0x200] sm:$0xff]  ;;  %v159_v0 = vld [vmem:[#allocation5 + $0x210] sm:$0xff] }
  0x68   :  { %285 = vmatprep.subr.mxu0 %v198_v20  ;;  %356 = vmatprep.subr.mxu1 %v200_v21  ;;  %v92_v63 = vld [vmem:[#allocation2 + $0x8] sm:$0xff]  ;;  %v91_v1 = vld [vmem:[#allocation2] sm:$0xff]  ;;  %v445_v4 = vld [vmem:[#allocation8 + $0x1e0] sm:$0xff] }
  0x69   :  { %286 = vmatpush2.msra.mxu0 %v197_v22  ;;  %357 = vmatpush2.msra.mxu1 %v199_v23  ;;  %v446_v2 = vld [vmem:[#allocation8 + $0x1e8] sm:$0xff]  ;;  %v573_v5 = vld [vmem:[#allocation8 + $0x5e0] sm:$0xff] }
  0x6a   :  { %287 = vmatprep.subr.mxu0 %v194_v24  ;;  %358 = vmatprep.subr.mxu1 %v196_v25  ;;  %v574_v3 = vld [vmem:[#allocation8 + $0x5e8] sm:$0xff]  ;;  %v441_v8 = vld [vmem:[#allocation8 + $0x1c0] sm:$0xff] }
  0x6b   :  { %288 = vmatpush2.msra.mxu0 %v193_v26  ;;  %359 = vmatpush2.msra.mxu1 %v195_v27  ;;  %v442_v6 = vld [vmem:[#allocation8 + $0x1c8] sm:$0xff]  ;;  %v569_v9 = vld [vmem:[#allocation8 + $0x5c0] sm:$0xff] }
  0x6c   :  { %289 = vmatprep.subr.mxu0 %v190_v28  ;;  %360 = vmatprep.subr.mxu1 %v192_v29  ;;  %v570_v7 = vld [vmem:[#allocation8 + $0x5c8] sm:$0xff]  ;;  %v437_v12 = vld [vmem:[#allocation8 + $0x1a0] sm:$0xff] }
  0x6d   :  { %290 = vmatpush2.msra.mxu0 %v189_v30  ;;  %361 = vmatpush2.msra.mxu1 %v191_v31  ;;  %v438_v10 = vld [vmem:[#allocation8 + $0x1a8] sm:$0xff]  ;;  %v565_v13 = vld [vmem:[#allocation8 + $0x5a0] sm:$0xff] }
  0x6e   :  { %291 = vmatprep.subr.mxu0 %v186_v32  ;;  %362 = vmatprep.subr.mxu1 %v188_v33  ;;  %v566_v11 = vld [vmem:[#allocation8 + $0x5a8] sm:$0xff]  ;;  %v433_v16 = vld [vmem:[#allocation8 + $0x180] sm:$0xff] }
  0x6f   :  { %292 = vmatpush2.msra.mxu0 %v185_v34  ;;  %363 = vmatpush2.msra.mxu1 %v187_v35  ;;  %v434_v14 = vld [vmem:[#allocation8 + $0x188] sm:$0xff]  ;;  %v561_v17 = vld [vmem:[#allocation8 + $0x580] sm:$0xff] }
  0x70   :  { %293 = vmatprep.subr.mxu0 %v182_v36  ;;  %364 = vmatprep.subr.mxu1 %v184_v37  ;;  %v562_v15 = vld [vmem:[#allocation8 + $0x588] sm:$0xff]  ;;  %v429_v20 = vld [vmem:[#allocation8 + $0x160] sm:$0xff] }
  0x71   :  { %294 = vmatpush2.msra.mxu0 %v181_v38  ;;  %365 = vmatpush2.msra.mxu1 %v183_v39  ;;  %v430_v18 = vld [vmem:[#allocation8 + $0x168] sm:$0xff]  ;;  %v557_v21 = vld [vmem:[#allocation8 + $0x560] sm:$0xff] }
  0x72   :  { %295 = vmatprep.subr.mxu0 %v178_v40  ;;  %366 = vmatprep.subr.mxu1 %v180_v41  ;;  %v558_v19 = vld [vmem:[#allocation8 + $0x568] sm:$0xff]  ;;  %v425_v24 = vld [vmem:[#allocation8 + $0x140] sm:$0xff] }
  0x73   :  { %296 = vmatpush2.msra.mxu0 %v177_v42  ;;  %367 = vmatpush2.msra.mxu1 %v179_v43  ;;  %v426_v22 = vld [vmem:[#allocation8 + $0x148] sm:$0xff]  ;;  %v553_v25 = vld [vmem:[#allocation8 + $0x540] sm:$0xff] }
  0x74   :  { %297 = vmatprep.subr.mxu0 %v174_v44  ;;  %368 = vmatprep.subr.mxu1 %v176_v45  ;;  %v554_v23 = vld [vmem:[#allocation8 + $0x548] sm:$0xff]  ;;  %v421_v28 = vld [vmem:[#allocation8 + $0x120] sm:$0xff] }
  0x75   :  { %298 = vmatpush2.msra.mxu0 %v173_v46  ;;  %369 = vmatpush2.msra.mxu1 %v175_v47  ;;  %v422_v26 = vld [vmem:[#allocation8 + $0x128] sm:$0xff]  ;;  %v549_v29 = vld [vmem:[#allocation8 + $0x520] sm:$0xff] }
  0x76   :  { %299 = vmatprep.subr.mxu0 %v170_v48  ;;  %370 = vmatprep.subr.mxu1 %v172_v49  ;;  %v550_v27 = vld [vmem:[#allocation8 + $0x528] sm:$0xff]  ;;  %v417_v32 = vld [vmem:[#allocation8 + $0x100] sm:$0xff] }
  0x77   :  { %300 = vmatpush2.msra.mxu0 %v169_v50  ;;  %371 = vmatpush2.msra.mxu1 %v171_v51  ;;  %v418_v30 = vld [vmem:[#allocation8 + $0x108] sm:$0xff]  ;;  %v545_v33 = vld [vmem:[#allocation8 + $0x500] sm:$0xff] }
  0x78   :  { %301 = vmatprep.subr.mxu0 %v166_v52  ;;  %372 = vmatprep.subr.mxu1 %v168_v53  ;;  %v546_v31 = vld [vmem:[#allocation8 + $0x508] sm:$0xff]  ;;  %v413_v36 = vld [vmem:[#allocation8 + $0xe0] sm:$0xff] }
  0x79   :  { %302 = vmatpush2.msra.mxu0 %v165_v54  ;;  %373 = vmatpush2.msra.mxu1 %v167_v55  ;;  %v414_v34 = vld [vmem:[#allocation8 + $0xe8] sm:$0xff]  ;;  %v541_v37 = vld [vmem:[#allocation8 + $0x4e0] sm:$0xff] }
  0x7a   :  { %303 = vmatprep.subr.mxu0 %v162_v56  ;;  %374 = vmatprep.subr.mxu1 %v164_v57  ;;  %v542_v35 = vld [vmem:[#allocation8 + $0x4e8] sm:$0xff]  ;;  %v409_v40 = vld [vmem:[#allocation8 + $0xc0] sm:$0xff] }
  0x7b   :  { %304 = vmatpush2.msra.mxu0 %v161_v58  ;;  %375 = vmatpush2.msra.mxu1 %v163_v59  ;;  %v410_v38 = vld [vmem:[#allocation8 + $0xc8] sm:$0xff]  ;;  %v537_v41 = vld [vmem:[#allocation8 + $0x4c0] sm:$0xff] }
  0x7c   :  { %305 = vmatprep.subr.mxu0 %v158_v60  ;;  %376 = vmatprep.subr.mxu1 %v160_v61  ;;  %v538_v39 = vld [vmem:[#allocation8 + $0x4c8] sm:$0xff]  ;;  %v405_v44 = vld [vmem:[#allocation8 + $0xa0] sm:$0xff] }
  0x7d   :  { %306 = vmatpush2.msra.mxu0 %v157_v62  ;;  %307 = vmatprep.mubr.f32.mxu0 %v92_v63  ;;  %v406_v42 = vld [vmem:[#allocation8 + $0xa8] sm:$0xff]  ;;  %v533_v45 = vld [vmem:[#allocation8 + $0x4a0] sm:$0xff] }
  0x7e   :  { %377 = vmatpush2.msra.mxu1 %v159_v0  ;;  %378 = vmatprep.mubr.f32.mxu1 %v92_v63  ;;  %v534_v43 = vld [vmem:[#allocation8 + $0x4a8] sm:$0xff]  ;;  %v401_v48 = vld [vmem:[#allocation8 + $0x80] sm:$0xff] }
  0x7f   :  { %308 = vmatmul.mubr.f32.vlgmr.msra.gmra.mxu0 %v91_v1  ;;  %379 = vmatmul.mubr.f32.vlgmr.msra.gmra.mxu1 %v91_v1  ;;  %v402_v46 = vld [vmem:[#allocation8 + $0x88] sm:$0xff]  ;;  %v529_v49 = vld [vmem:[#allocation8 + $0x480] sm:$0xff] }
  0x80   :  { %663 = vmatprep.subr.mxu0 %v446_v2  ;;  %734 = vmatprep.subr.mxu1 %v574_v3  ;;  %v530_v47 = vld [vmem:[#allocation8 + $0x488] sm:$0xff]  ;;  %v397_v52 = vld [vmem:[#allocation8 + $0x60] sm:$0xff] }
  0x81   :  { %664 = vmatpush1.msra.mxu0 %v445_v4  ;;  %735 = vmatpush1.msra.mxu1 %v573_v5  ;;  %v398_v50 = vld [vmem:[#allocation8 + $0x68] sm:$0xff]  ;;  %v525_v53 = vld [vmem:[#allocation8 + $0x460] sm:$0xff] }
  0x82   :  { %665 = vmatprep.subr.mxu0 %v442_v6  ;;  %736 = vmatprep.subr.mxu1 %v570_v7  ;;  %v526_v51 = vld [vmem:[#allocation8 + $0x468] sm:$0xff]  ;;  %v393_v56 = vld [vmem:[#allocation8 + $0x40] sm:$0xff] }
  0x83   :  { %666 = vmatpush1.msra.mxu0 %v441_v8  ;;  %737 = vmatpush1.msra.mxu1 %v569_v9  ;;  %v394_v54 = vld [vmem:[#allocation8 + $0x48] sm:$0xff]  ;;  %v521_v57 = vld [vmem:[#allocation8 + $0x440] sm:$0xff] }
  0x84   :  { %667 = vmatprep.subr.mxu0 %v438_v10  ;;  %738 = vmatprep.subr.mxu1 %v566_v11  ;;  %v522_v55 = vld [vmem:[#allocation8 + $0x448] sm:$0xff]  ;;  %v389_v60 = vld [vmem:[#allocation8 + $0x20] sm:$0xff] }
  0x85   :  { %668 = vmatpush1.msra.mxu0 %v437_v12  ;;  %739 = vmatpush1.msra.mxu1 %v565_v13  ;;  %v390_v58 = vld [vmem:[#allocation8 + $0x28] sm:$0xff]  ;;  %v517_v61 = vld [vmem:[#allocation8 + $0x420] sm:$0xff] }
  0x86   :  { %669 = vmatprep.subr.mxu0 %v434_v14  ;;  %740 = vmatprep.subr.mxu1 %v562_v15  ;;  %v518_v59 = vld [vmem:[#allocation8 + $0x428] sm:$0xff]  ;;  %v385_v0 = vld [vmem:[#allocation8] sm:$0xff] }
  0x87   :  { %670 = vmatpush1.msra.mxu0 %v433_v16  ;;  %741 = vmatpush1.msra.mxu1 %v561_v17  ;;  %v386_v62 = vld [vmem:[#allocation8 + $0x8] sm:$0xff]  ;;  %v513_v1 = vld [vmem:[#allocation8 + $0x400] sm:$0xff] }
  0x88   :  { %671 = vmatprep.subr.mxu0 %v430_v18  ;;  %742 = vmatprep.subr.mxu1 %v558_v19  ;;  %v514_v63 = vld [vmem:[#allocation8 + $0x408] sm:$0xff]  ;;  %v509_v4 = vld [vmem:[#allocation8 + $0x3e0] sm:$0xff] }
  0x89   :  { %672 = vmatpush1.msra.mxu0 %v429_v20  ;;  %743 = vmatpush1.msra.mxu1 %v557_v21  ;;  %v510_v2 = vld [vmem:[#allocation8 + $0x3e8] sm:$0xff]  ;;  %v637_v5 = vld [vmem:[#allocation8 + $0x7e0] sm:$0xff] }
  0x8a   :  { %673 = vmatprep.subr.mxu0 %v426_v22  ;;  %744 = vmatprep.subr.mxu1 %v554_v23  ;;  %v638_v3 = vld [vmem:[#allocation8 + $0x7e8] sm:$0xff]  ;;  %v505_v8 = vld [vmem:[#allocation8 + $0x3c0] sm:$0xff] }
  0x8b   :  { %674 = vmatpush1.msra.mxu0 %v425_v24  ;;  %745 = vmatpush1.msra.mxu1 %v553_v25  ;;  %v506_v6 = vld [vmem:[#allocation8 + $0x3c8] sm:$0xff]  ;;  %v633_v9 = vld [vmem:[#allocation8 + $0x7c0] sm:$0xff] }
  0x8c   :  { %675 = vmatprep.subr.mxu0 %v422_v26  ;;  %746 = vmatprep.subr.mxu1 %v550_v27  ;;  %v634_v7 = vld [vmem:[#allocation8 + $0x7c8] sm:$0xff]  ;;  %v501_v12 = vld [vmem:[#allocation8 + $0x3a0] sm:$0xff] }
  0x8d   :  { %676 = vmatpush1.msra.mxu0 %v421_v28  ;;  %747 = vmatpush1.msra.mxu1 %v549_v29  ;;  %v502_v10 = vld [vmem:[#allocation8 + $0x3a8] sm:$0xff]  ;;  %v629_v13 = vld [vmem:[#allocation8 + $0x7a0] sm:$0xff] }
  0x8e   :  { %677 = vmatprep.subr.mxu0 %v418_v30  ;;  %748 = vmatprep.subr.mxu1 %v546_v31  ;;  %v630_v11 = vld [vmem:[#allocation8 + $0x7a8] sm:$0xff]  ;;  %v497_v16 = vld [vmem:[#allocation8 + $0x380] sm:$0xff] }
  0x8f   :  { %678 = vmatpush1.msra.mxu0 %v417_v32  ;;  %749 = vmatpush1.msra.mxu1 %v545_v33  ;;  %v498_v14 = vld [vmem:[#allocation8 + $0x388] sm:$0xff]  ;;  %v625_v17 = vld [vmem:[#allocation8 + $0x780] sm:$0xff] }
  0x90   :  { %679 = vmatprep.subr.mxu0 %v414_v34  ;;  %750 = vmatprep.subr.mxu1 %v542_v35  ;;  %v626_v15 = vld [vmem:[#allocation8 + $0x788] sm:$0xff]  ;;  %v493_v20 = vld [vmem:[#allocation8 + $0x360] sm:$0xff] }
  0x91   :  { %680 = vmatpush1.msra.mxu0 %v413_v36  ;;  %751 = vmatpush1.msra.mxu1 %v541_v37  ;;  %v494_v18 = vld [vmem:[#allocation8 + $0x368] sm:$0xff]  ;;  %v621_v21 = vld [vmem:[#allocation8 + $0x760] sm:$0xff] }
  0x92   :  { %681 = vmatprep.subr.mxu0 %v410_v38  ;;  %752 = vmatprep.subr.mxu1 %v538_v39  ;;  %v622_v19 = vld [vmem:[#allocation8 + $0x768] sm:$0xff]  ;;  %v489_v24 = vld [vmem:[#allocation8 + $0x340] sm:$0xff] }
  0x93   :  { %682 = vmatpush1.msra.mxu0 %v409_v40  ;;  %753 = vmatpush1.msra.mxu1 %v537_v41  ;;  %v490_v22 = vld [vmem:[#allocation8 + $0x348] sm:$0xff]  ;;  %v617_v25 = vld [vmem:[#allocation8 + $0x740] sm:$0xff] }
  0x94   :  { %683 = vmatprep.subr.mxu0 %v406_v42  ;;  %754 = vmatprep.subr.mxu1 %v534_v43  ;;  %v618_v23 = vld [vmem:[#allocation8 + $0x748] sm:$0xff]  ;;  %v485_v28 = vld [vmem:[#allocation8 + $0x320] sm:$0xff] }
  0x95   :  { %684 = vmatpush1.msra.mxu0 %v405_v44  ;;  %755 = vmatpush1.msra.mxu1 %v533_v45  ;;  %v486_v26 = vld [vmem:[#allocation8 + $0x328] sm:$0xff]  ;;  %v613_v29 = vld [vmem:[#allocation8 + $0x720] sm:$0xff] }
  0x96   :  { %685 = vmatprep.subr.mxu0 %v402_v46  ;;  %756 = vmatprep.subr.mxu1 %v530_v47  ;;  %v614_v27 = vld [vmem:[#allocation8 + $0x728] sm:$0xff]  ;;  %v481_v32 = vld [vmem:[#allocation8 + $0x300] sm:$0xff] }
  0x97   :  { %686 = vmatpush1.msra.mxu0 %v401_v48  ;;  %757 = vmatpush1.msra.mxu1 %v529_v49  ;;  %v482_v30 = vld [vmem:[#allocation8 + $0x308] sm:$0xff]  ;;  %v609_v33 = vld [vmem:[#allocation8 + $0x700] sm:$0xff] }
  0x98   :  { %687 = vmatprep.subr.mxu0 %v398_v50  ;;  %758 = vmatprep.subr.mxu1 %v526_v51  ;;  %v610_v31 = vld [vmem:[#allocation8 + $0x708] sm:$0xff]  ;;  %v477_v36 = vld [vmem:[#allocation8 + $0x2e0] sm:$0xff] }
  0x99   :  { %688 = vmatpush1.msra.mxu0 %v397_v52  ;;  %759 = vmatpush1.msra.mxu1 %v525_v53  ;;  %v478_v34 = vld [vmem:[#allocation8 + $0x2e8] sm:$0xff]  ;;  %v605_v37 = vld [vmem:[#allocation8 + $0x6e0] sm:$0xff] }
  0x9a   :  { %689 = vmatprep.subr.mxu0 %v394_v54  ;;  %760 = vmatprep.subr.mxu1 %v522_v55  ;;  %v606_v35 = vld [vmem:[#allocation8 + $0x6e8] sm:$0xff]  ;;  %v473_v40 = vld [vmem:[#allocation8 + $0x2c0] sm:$0xff] }
  0x9b   :  { %690 = vmatpush1.msra.mxu0 %v393_v56  ;;  %761 = vmatpush1.msra.mxu1 %v521_v57  ;;  %v474_v38 = vld [vmem:[#allocation8 + $0x2c8] sm:$0xff]  ;;  %v601_v41 = vld [vmem:[#allocation8 + $0x6c0] sm:$0xff] }
  0x9c   :  { %691 = vmatprep.subr.mxu0 %v390_v58  ;;  %762 = vmatprep.subr.mxu1 %v518_v59  ;;  %v602_v39 = vld [vmem:[#allocation8 + $0x6c8] sm:$0xff]  ;;  %v469_v44 = vld [vmem:[#allocation8 + $0x2a0] sm:$0xff] }
  0x9d   :  { %692 = vmatpush1.msra.mxu0 %v389_v60  ;;  %763 = vmatpush1.msra.mxu1 %v517_v61  ;;  %v470_v42 = vld [vmem:[#allocation8 + $0x2a8] sm:$0xff]  ;;  %v597_v45 = vld [vmem:[#allocation8 + $0x6a0] sm:$0xff] }
  0x9e   :  { %693 = vmatprep.subr.mxu0 %v386_v62  ;;  %764 = vmatprep.subr.mxu1 %v514_v63  ;;  %v598_v43 = vld [vmem:[#allocation8 + $0x6a8] sm:$0xff]  ;;  %v465_v48 = vld [vmem:[#allocation8 + $0x280] sm:$0xff] }
  0x9f   :  { %694 = vmatpush1.msra.mxu0 %v385_v0  ;;  %765 = vmatpush1.msra.mxu1 %v513_v1  ;;  %v466_v46 = vld [vmem:[#allocation8 + $0x288] sm:$0xff]  ;;  %v593_v49 = vld [vmem:[#allocation8 + $0x680] sm:$0xff] }
  0xa0   :  { %695 = vmatprep.subr.mxu0 %v510_v2  ;;  %766 = vmatprep.subr.mxu1 %v638_v3  ;;  %v594_v47 = vld [vmem:[#allocation8 + $0x688] sm:$0xff]  ;;  %v461_v52 = vld [vmem:[#allocation8 + $0x260] sm:$0xff]  ;;  %v448_v2 = vld [vmem:[#allocation8 + $0x1f8] sm:$0xff] }
  0xa1   :  { %696 = vmatpush2.msra.mxu0 %v509_v4  ;;  %767 = vmatpush2.msra.mxu1 %v637_v5  ;;  %v462_v50 = vld [vmem:[#allocation8 + $0x268] sm:$0xff]  ;;  %v589_v53 = vld [vmem:[#allocation8 + $0x660] sm:$0xff]  ;;  %v576_v3 = vld [vmem:[#allocation8 + $0x5f8] sm:$0xff]  ;;  %v223_v4 = vlaneseq }
  0xa2   :  { %697 = vmatprep.subr.mxu0 %v506_v6  ;;  %768 = vmatprep.subr.mxu1 %v634_v7  ;;  %v590_v51 = vld [vmem:[#allocation8 + $0x668] sm:$0xff]  ;;  %v457_v56 = vld [vmem:[#allocation8 + $0x240] sm:$0xff] }
  0xa3   :  { %698 = vmatpush2.msra.mxu0 %v505_v8  ;;  %769 = vmatpush2.msra.mxu1 %v633_v9  ;;  %v458_v54 = vld [vmem:[#allocation8 + $0x248] sm:$0xff]  ;;  %v585_v57 = vld [vmem:[#allocation8 + $0x640] sm:$0xff]  ;;  %v1463_v5 = vshrl.u32 %v223_v4, 7  ;;  %v531_v4 = vld [vmem:[#allocation8 + $0x490] sm:$0xff] }
  0xa4   :  { %699 = vmatprep.subr.mxu0 %v502_v10  ;;  %770 = vmatprep.subr.mxu1 %v630_v11  ;;  %v586_v55 = vld [vmem:[#allocation8 + $0x648] sm:$0xff]  ;;  %v453_v60 = vld [vmem:[#allocation8 + $0x220] sm:$0xff]  ;;  %v221_v10 = vld [vmem:[#allocation7] sm:$0xf] }
  0xa5   :  { %700 = vmatpush2.msra.mxu0 %v501_v12  ;;  %771 = vmatpush2.msra.mxu1 %v629_v13  ;;  %v454_v58 = vld [vmem:[#allocation8 + $0x228] sm:$0xff]  ;;  %v581_v61 = vld [vmem:[#allocation8 + $0x620] sm:$0xff]  ;;  %v233_v6 = vsub.s32 2, %v1463_v5  ;;  %v1467_v7 = vsub.s32 1, %v1463_v5  ;;  %v237_v8 = vsub.s32 3, %v1463_v5  ;;  %v1471_v9 = vsub.s32 0, %v1463_v5 }
  0xa6   :  { %701 = vmatprep.subr.mxu0 %v498_v14  ;;  %772 = vmatprep.subr.mxu1 %v626_v15  ;;  %v582_v59 = vld [vmem:[#allocation8 + $0x628] sm:$0xff]  ;;  %v449_v0 = vld [vmem:[#allocation8 + $0x200] sm:$0xff] }
  0xa7   :  { %702 = vmatpush2.msra.mxu0 %v497_v16  ;;  %773 = vmatpush2.msra.mxu1 %v625_v17  ;;  %v450_v62 = vld [vmem:[#allocation8 + $0x208] sm:$0xff]  ;;  %v577_v1 = vld [vmem:[#allocation8 + $0x600] sm:$0xff]  ;;  %v234_v11 = vrot.slane %v221_v10, %v233_v6  ;;  %v230_v12 = vrot.slane %v221_v10, %v1467_v7  ;;  %v238_v13 = vrot.slane %v221_v10, %v237_v8 }
  0xa8   :  { %703 = vmatprep.subr.mxu0 %v494_v18  ;;  %774 = vmatprep.subr.mxu1 %v622_v19  ;;  %v578_v63 = vld [vmem:[#allocation8 + $0x608] sm:$0xff]  ;;  %v226_v14 = vrot.slane %v221_v10, %v1471_v9  ;;  %v400_v10 = vld [vmem:[#allocation8 + $0x78] sm:$0xff] }
  0xa9   :  { %704 = vmatpush2.msra.mxu0 %v493_v20  ;;  %775 = vmatpush2.msra.mxu1 %v621_v21 }
  0xaa   :  { %705 = vmatprep.subr.mxu0 %v490_v22  ;;  %776 = vmatprep.subr.mxu1 %v618_v23  ;;  %v447_v23 = vld [vmem:[#allocation8 + $0x1f0] sm:$0xff] }
  0xab   :  { %706 = vmatpush2.msra.mxu0 %v489_v24  ;;  %777 = vmatpush2.msra.mxu1 %v617_v25  ;;  %v575_v24 = vld [vmem:[#allocation8 + $0x5f0] sm:$0xff]  ;;  %v444_v25 = vld [vmem:[#allocation8 + $0x1d8] sm:$0xff] }
  0xac   :  { %707 = vmatprep.subr.mxu0 %v486_v26  ;;  %778 = vmatprep.subr.mxu1 %v614_v27  ;;  %v572_v26 = vld [vmem:[#allocation8 + $0x5d8] sm:$0xff]  ;;  %v443_v27 = vld [vmem:[#allocation8 + $0x1d0] sm:$0xff] }
  0xad   :  { %708 = vmatpush2.msra.mxu0 %v485_v28  ;;  %779 = vmatpush2.msra.mxu1 %v613_v29  ;;  %v571_v28 = vld [vmem:[#allocation8 + $0x5d0] sm:$0xff]  ;;  %v440_v29 = vld [vmem:[#allocation8 + $0x1b8] sm:$0xff] }
  0xae   :  { %709 = vmatprep.subr.mxu0 %v482_v30  ;;  %780 = vmatprep.subr.mxu1 %v610_v31  ;;  %v568_v30 = vld [vmem:[#allocation8 + $0x5b8] sm:$0xff]  ;;  %v439_v31 = vld [vmem:[#allocation8 + $0x1b0] sm:$0xff] }
  0xaf   :  { %710 = vmatpush2.msra.mxu0 %v481_v32  ;;  %781 = vmatpush2.msra.mxu1 %v609_v33  ;;  %v567_v32 = vld [vmem:[#allocation8 + $0x5b0] sm:$0xff]  ;;  %v436_v33 = vld [vmem:[#allocation8 + $0x198] sm:$0xff] }
  0xb0   :  { %711 = vmatprep.subr.mxu0 %v478_v34  ;;  %782 = vmatprep.subr.mxu1 %v606_v35  ;;  %v564_v34 = vld [vmem:[#allocation8 + $0x598] sm:$0xff]  ;;  %v435_v35 = vld [vmem:[#allocation8 + $0x190] sm:$0xff] }
  0xb1   :  { %712 = vmatpush2.msra.mxu0 %v477_v36  ;;  %783 = vmatpush2.msra.mxu1 %v605_v37  ;;  %v563_v36 = vld [vmem:[#allocation8 + $0x590] sm:$0xff]  ;;  %v432_v37 = vld [vmem:[#allocation8 + $0x178] sm:$0xff] }
  0xb2   :  { %713 = vmatprep.subr.mxu0 %v474_v38  ;;  %784 = vmatprep.subr.mxu1 %v602_v39  ;;  %v560_v38 = vld [vmem:[#allocation8 + $0x578] sm:$0xff]  ;;  %v431_v39 = vld [vmem:[#allocation8 + $0x170] sm:$0xff] }
  0xb3   :  { %714 = vmatpush2.msra.mxu0 %v473_v40  ;;  %785 = vmatpush2.msra.mxu1 %v601_v41  ;;  %v559_v40 = vld [vmem:[#allocation8 + $0x570] sm:$0xff]  ;;  %v428_v41 = vld [vmem:[#allocation8 + $0x158] sm:$0xff] }
  0xb4   :  { %715 = vmatprep.subr.mxu0 %v470_v42  ;;  %786 = vmatprep.subr.mxu1 %v598_v43  ;;  %v556_v42 = vld [vmem:[#allocation8 + $0x558] sm:$0xff]  ;;  %v427_v43 = vld [vmem:[#allocation8 + $0x150] sm:$0xff] }
  0xb5   :  { %716 = vmatpush2.msra.mxu0 %v469_v44  ;;  %787 = vmatpush2.msra.mxu1 %v597_v45  ;;  %v555_v44 = vld [vmem:[#allocation8 + $0x550] sm:$0xff]  ;;  %v424_v45 = vld [vmem:[#allocation8 + $0x138] sm:$0xff] }
  0xb6   :  { %717 = vmatprep.subr.mxu0 %v466_v46  ;;  %788 = vmatprep.subr.mxu1 %v594_v47  ;;  %v552_v46 = vld [vmem:[#allocation8 + $0x538] sm:$0xff]  ;;  %v423_v47 = vld [vmem:[#allocation8 + $0x130] sm:$0xff] }
  0xb7   :  { %718 = vmatpush2.msra.mxu0 %v465_v48  ;;  %789 = vmatpush2.msra.mxu1 %v593_v49  ;;  %v551_v48 = vld [vmem:[#allocation8 + $0x530] sm:$0xff]  ;;  %v420_v49 = vld [vmem:[#allocation8 + $0x118] sm:$0xff] }
  0xb8   :  { %719 = vmatprep.subr.mxu0 %v462_v50  ;;  %790 = vmatprep.subr.mxu1 %v590_v51  ;;  %v548_v50 = vld [vmem:[#allocation8 + $0x518] sm:$0xff]  ;;  %v419_v51 = vld [vmem:[#allocation8 + $0x110] sm:$0xff] }
  0xb9   :  { %720 = vmatpush2.msra.mxu0 %v461_v52  ;;  %791 = vmatpush2.msra.mxu1 %v589_v53  ;;  %v547_v52 = vld [vmem:[#allocation8 + $0x510] sm:$0xff]  ;;  %v416_v53 = vld [vmem:[#allocation8 + $0xf8] sm:$0xff] }
  0xba   :  { %721 = vmatprep.subr.mxu0 %v458_v54  ;;  %792 = vmatprep.subr.mxu1 %v586_v55  ;;  %v544_v54 = vld [vmem:[#allocation8 + $0x4f8] sm:$0xff]  ;;  %v415_v55 = vld [vmem:[#allocation8 + $0xf0] sm:$0xff] }
  0xbb   :  { %722 = vmatpush2.msra.mxu0 %v457_v56  ;;  %793 = vmatpush2.msra.mxu1 %v585_v57  ;;  %v543_v56 = vld [vmem:[#allocation8 + $0x4f0] sm:$0xff]  ;;  %v412_v57 = vld [vmem:[#allocation8 + $0xd8] sm:$0xff] }
  0xbc   :  { %723 = vmatprep.subr.mxu0 %v454_v58  ;;  %794 = vmatprep.subr.mxu1 %v582_v59  ;;  %v540_v58 = vld [vmem:[#allocation8 + $0x4d8] sm:$0xff]  ;;  %v411_v59 = vld [vmem:[#allocation8 + $0xd0] sm:$0xff] }
  0xbd   :  { %724 = vmatpush2.msra.mxu0 %v453_v60  ;;  %795 = vmatpush2.msra.mxu1 %v581_v61  ;;  %v539_v60 = vld [vmem:[#allocation8 + $0x4d0] sm:$0xff]  ;;  %v408_v61 = vld [vmem:[#allocation8 + $0xb8] sm:$0xff] }
  0xbe   :  { %725 = vmatprep.subr.mxu0 %v450_v62  ;;  %796 = vmatprep.subr.mxu1 %v578_v63  ;;  %v536_v62 = vld [vmem:[#allocation8 + $0x4b8] sm:$0xff]  ;;  %v407_v63 = vld [vmem:[#allocation8 + $0xb0] sm:$0xff] }
  0xbf   :  { %726 = vmatpush2.msra.mxu0 %v449_v0  ;;  %797 = vmatpush2.msra.mxu1 %v577_v1  ;;  %v535_v0 = vld [vmem:[#allocation8 + $0x4b0] sm:$0xff]  ;;  %v404_v1 = vld [vmem:[#allocation8 + $0x98] sm:$0xff] }
  0xc0   :  { %805 = vmatprep.subr.mxu0 %v448_v2  ;;  %876 = vmatprep.subr.mxu1 %v576_v3  ;;  %v532_v2 = vld [vmem:[#allocation8 + $0x498] sm:$0xff]  ;;  %v403_v3 = vld [vmem:[#allocation8 + $0x90] sm:$0xff] }
 0x13f   :  { %v309_v15 = vpop.f32.mrf.mxu0  ;;  %v380_v16 = vpop.f32.mrf.mxu1 }
 0x140   :  { %v1479_v17 = vadd.f32 %v380_v16, %v234_v11  ;;  %v1481_v22 = vadd.f32 %v309_v15, %v226_v14  ;;  %v528_v11 = vld [vmem:[#allocation8 + $0x478] sm:$0xff]  ;;  %v395_v16 = vld [vmem:[#allocation8 + $0x50] sm:$0xff] }
 0x141   :  { %v311_v18 = vpop.f32.mrf.mxu0  ;;  %v382_v19 = vpop.f32.mrf.mxu1  ;;  %v396_v14 = vld [vmem:[#allocation8 + $0x58] sm:$0xff] }
 0x142   :  { %v312_v20 = vadd.f32 %v311_v18, %v230_v12  ;;  %v383_v21 = vadd.f32 %v382_v19, %v238_v13  ;;  %v399_v12 = vld [vmem:[#allocation8 + $0x70] sm:$0xff]  ;;  %v524_v15 = vld [vmem:[#allocation8 + $0x458] sm:$0xff] }
 0x143   :  { %v527_v13 = vld [vmem:[#allocation8 + $0x470] sm:$0xff]  ;;  %v392_v19 = vld [vmem:[#allocation8 + $0x38] sm:$0xff] }
 0x144   :  { %727 = vmatprep.mubr.f32.mxu0 %v312_v20  ;;  %798 = vmatprep.mubr.f32.mxu1 %v383_v21  ;;  %v523_v18 = vld [vmem:[#allocation8 + $0x450] sm:$0xff] }
 0x145   :  { %728 = vmatmul.mubr.f32.vlgmr.msra.gmra.mxu0 %v1481_v22  ;;  %799 = vmatmul.mubr.f32.vlgmr.msra.gmra.mxu1 %v1479_v17 }
 0x146   :  { %806 = vmatpush1.msra.mxu0 %v447_v23  ;;  %877 = vmatpush1.msra.mxu1 %v575_v24  ;;  %v519_v23 = vld [vmem:[#allocation8 + $0x430] sm:$0xff]  ;;  %v388_v24 = vld [vmem:[#allocation8 + $0x18] sm:$0xff] }
 0x147   :  { %807 = vmatprep.subr.mxu0 %v444_v25  ;;  %869 = vmatprep.mubr.f32.mxu0 %v312_v20  ;;  %v520_v20 = vld [vmem:[#allocation8 + $0x438] sm:$0xff] }
 0x148   :  { %878 = vmatprep.subr.mxu1 %v572_v26  ;;  %940 = vmatprep.mubr.f32.mxu1 %v383_v21  ;;  %v391_v21 = vld [vmem:[#allocation8 + $0x30] sm:$0xff]  ;;  %v516_v25 = vld [vmem:[#allocation8 + $0x418] sm:$0xff] }
 0x149   :  { %808 = vmatpush1.msra.mxu0 %v443_v27  ;;  %879 = vmatpush1.msra.mxu1 %v571_v28  ;;  %v387_v26 = vld [vmem:[#allocation8 + $0x10] sm:$0xff]  ;;  %v512_v28 = vld [vmem:[#allocation8 + $0x3f8] sm:$0xff] }
 0x14a   :  { %809 = vmatprep.subr.mxu0 %v440_v29  ;;  %880 = vmatprep.subr.mxu1 %v568_v30  ;;  %v515_v27 = vld [vmem:[#allocation8 + $0x410] sm:$0xff]  ;;  %v640_v29 = vld [vmem:[#allocation8 + $0x7f8] sm:$0xff] }
 0x14b   :  { %810 = vmatpush1.msra.mxu0 %v439_v31  ;;  %881 = vmatpush1.msra.mxu1 %v567_v32  ;;  %v511_v30 = vld [vmem:[#allocation8 + $0x3f0] sm:$0xff]  ;;  %v508_v32 = vld [vmem:[#allocation8 + $0x3d8] sm:$0xff] }
 0x14c   :  { %811 = vmatprep.subr.mxu0 %v436_v33  ;;  %882 = vmatprep.subr.mxu1 %v564_v34  ;;  %v639_v31 = vld [vmem:[#allocation8 + $0x7f0] sm:$0xff]  ;;  %v636_v33 = vld [vmem:[#allocation8 + $0x7d8] sm:$0xff] }
 0x14d   :  { %812 = vmatpush1.msra.mxu0 %v435_v35  ;;  %883 = vmatpush1.msra.mxu1 %v563_v36  ;;  %v507_v34 = vld [vmem:[#allocation8 + $0x3d0] sm:$0xff]  ;;  %v504_v36 = vld [vmem:[#allocation8 + $0x3b8] sm:$0xff] }
 0x14e   :  { %813 = vmatprep.subr.mxu0 %v432_v37  ;;  %884 = vmatprep.subr.mxu1 %v560_v38  ;;  %v635_v35 = vld [vmem:[#allocation8 + $0x7d0] sm:$0xff]  ;;  %v632_v37 = vld [vmem:[#allocation8 + $0x7b8] sm:$0xff] }
 0x14f   :  { %814 = vmatpush1.msra.mxu0 %v431_v39  ;;  %885 = vmatpush1.msra.mxu1 %v559_v40  ;;  %v503_v38 = vld [vmem:[#allocation8 + $0x3b0] sm:$0xff]  ;;  %v500_v40 = vld [vmem:[#allocation8 + $0x398] sm:$0xff] }
 0x150   :  { %815 = vmatprep.subr.mxu0 %v428_v41  ;;  %886 = vmatprep.subr.mxu1 %v556_v42  ;;  %v631_v39 = vld [vmem:[#allocation8 + $0x7b0] sm:$0xff]  ;;  %v628_v41 = vld [vmem:[#allocation8 + $0x798] sm:$0xff] }
 0x151   :  { %816 = vmatpush1.msra.mxu0 %v427_v43  ;;  %887 = vmatpush1.msra.mxu1 %v555_v44  ;;  %v499_v42 = vld [vmem:[#allocation8 + $0x390] sm:$0xff]  ;;  %v496_v44 = vld [vmem:[#allocation8 + $0x378] sm:$0xff] }
 0x152   :  { %817 = vmatprep.subr.mxu0 %v424_v45  ;;  %888 = vmatprep.subr.mxu1 %v552_v46  ;;  %v627_v43 = vld [vmem:[#allocation8 + $0x790] sm:$0xff]  ;;  %v624_v45 = vld [vmem:[#allocation8 + $0x778] sm:$0xff] }
 0x153   :  { %818 = vmatpush1.msra.mxu0 %v423_v47  ;;  %889 = vmatpush1.msra.mxu1 %v551_v48  ;;  %v495_v46 = vld [vmem:[#allocation8 + $0x370] sm:$0xff]  ;;  %v492_v48 = vld [vmem:[#allocation8 + $0x358] sm:$0xff] }
 0x154   :  { %819 = vmatprep.subr.mxu0 %v420_v49  ;;  %890 = vmatprep.subr.mxu1 %v548_v50  ;;  %v623_v47 = vld [vmem:[#allocation8 + $0x770] sm:$0xff]  ;;  %v620_v49 = vld [vmem:[#allocation8 + $0x758] sm:$0xff] }
 0x155   :  { %820 = vmatpush1.msra.mxu0 %v419_v51  ;;  %891 = vmatpush1.msra.mxu1 %v547_v52  ;;  %v491_v50 = vld [vmem:[#allocation8 + $0x350] sm:$0xff]  ;;  %v488_v52 = vld [vmem:[#allocation8 + $0x338] sm:$0xff] }
 0x156   :  { %821 = vmatprep.subr.mxu0 %v416_v53  ;;  %892 = vmatprep.subr.mxu1 %v544_v54  ;;  %v619_v51 = vld [vmem:[#allocation8 + $0x750] sm:$0xff]  ;;  %v616_v53 = vld [vmem:[#allocation8 + $0x738] sm:$0xff] }
 0x157   :  { %822 = vmatpush1.msra.mxu0 %v415_v55  ;;  %893 = vmatpush1.msra.mxu1 %v543_v56  ;;  %v487_v54 = vld [vmem:[#allocation8 + $0x330] sm:$0xff]  ;;  %v484_v56 = vld [vmem:[#allocation8 + $0x318] sm:$0xff] }
 0x158   :  { %823 = vmatprep.subr.mxu0 %v412_v57  ;;  %894 = vmatprep.subr.mxu1 %v540_v58  ;;  %v615_v55 = vld [vmem:[#allocation8 + $0x730] sm:$0xff]  ;;  %v612_v57 = vld [vmem:[#allocation8 + $0x718] sm:$0xff] }
 0x159   :  { %824 = vmatpush1.msra.mxu0 %v411_v59  ;;  %895 = vmatpush1.msra.mxu1 %v539_v60  ;;  %v483_v58 = vld [vmem:[#allocation8 + $0x310] sm:$0xff]  ;;  %v480_v60 = vld [vmem:[#allocation8 + $0x2f8] sm:$0xff] }
 0x15a   :  { %825 = vmatprep.subr.mxu0 %v408_v61  ;;  %896 = vmatprep.subr.mxu1 %v536_v62  ;;  %v611_v59 = vld [vmem:[#allocation8 + $0x710] sm:$0xff]  ;;  %v608_v61 = vld [vmem:[#allocation8 + $0x6f8] sm:$0xff] }
 0x15b   :  { %826 = vmatpush1.msra.mxu0 %v407_v63  ;;  %897 = vmatpush1.msra.mxu1 %v535_v0  ;;  %v479_v62 = vld [vmem:[#allocation8 + $0x2f0] sm:$0xff]  ;;  %v476_v0 = vld [vmem:[#allocation8 + $0x2d8] sm:$0xff] }
 0x15c   :  { %827 = vmatprep.subr.mxu0 %v404_v1  ;;  %898 = vmatprep.subr.mxu1 %v532_v2  ;;  %v607_v63 = vld [vmem:[#allocation8 + $0x6f0] sm:$0xff]  ;;  %v604_v1 = vld [vmem:[#allocation8 + $0x6d8] sm:$0xff] }
 0x15d   :  { %828 = vmatpush1.msra.mxu0 %v403_v3  ;;  %899 = vmatpush1.msra.mxu1 %v531_v4  ;;  %v475_v2 = vld [vmem:[#allocation8 + $0x2d0] sm:$0xff]  ;;  %v472_v4 = vld [vmem:[#allocation8 + $0x2b8] sm:$0xff] }
 0x15e   :  { %829 = vmatprep.subr.mxu0 %v400_v10  ;;  %900 = vmatprep.subr.mxu1 %v528_v11  ;;  %v603_v3 = vld [vmem:[#allocation8 + $0x6d0] sm:$0xff]  ;;  %v600_v10 = vld [vmem:[#allocation8 + $0x6b8] sm:$0xff] }
 0x15f   :  { %830 = vmatpush1.msra.mxu0 %v399_v12  ;;  %901 = vmatpush1.msra.mxu1 %v527_v13  ;;  %v471_v11 = vld [vmem:[#allocation8 + $0x2b0] sm:$0xff]  ;;  %v468_v13 = vld [vmem:[#allocation8 + $0x298] sm:$0xff] }
 0x160   :  { %831 = vmatprep.subr.mxu0 %v396_v14  ;;  %902 = vmatprep.subr.mxu1 %v524_v15  ;;  %v599_v12 = vld [vmem:[#allocation8 + $0x6b0] sm:$0xff]  ;;  %v596_v14 = vld [vmem:[#allocation8 + $0x698] sm:$0xff] }
 0x161   :  { %832 = vmatpush1.msra.mxu0 %v395_v16  ;;  %903 = vmatpush1.msra.mxu1 %v523_v18  ;;  %v467_v15 = vld [vmem:[#allocation8 + $0x290] sm:$0xff]  ;;  %v464_v18 = vld [vmem:[#allocation8 + $0x278] sm:$0xff] }
 0x162   :  { %833 = vmatprep.subr.mxu0 %v392_v19  ;;  %904 = vmatprep.subr.mxu1 %v520_v20  ;;  %v595_v16 = vld [vmem:[#allocation8 + $0x690] sm:$0xff]  ;;  %v592_v19 = vld [vmem:[#allocation8 + $0x678] sm:$0xff] }
 0x163   :  { %834 = vmatpush1.msra.mxu0 %v391_v21  ;;  %905 = vmatpush1.msra.mxu1 %v519_v23  ;;  %v463_v20 = vld [vmem:[#allocation8 + $0x270] sm:$0xff]  ;;  %v460_v23 = vld [vmem:[#allocation8 + $0x258] sm:$0xff] }
 0x164   :  { %835 = vmatprep.subr.mxu0 %v388_v24  ;;  %906 = vmatprep.subr.mxu1 %v516_v25  ;;  %v591_v21 = vld [vmem:[#allocation8 + $0x670] sm:$0xff]  ;;  %v588_v24 = vld [vmem:[#allocation8 + $0x658] sm:$0xff] }
 0x165   :  { %836 = vmatpush1.msra.mxu0 %v387_v26  ;;  %907 = vmatpush1.msra.mxu1 %v515_v27  ;;  %v459_v25 = vld [vmem:[#allocation8 + $0x250] sm:$0xff]  ;;  %v456_v27 = vld [vmem:[#allocation8 + $0x238] sm:$0xff] }
 0x166   :  { %837 = vmatprep.subr.mxu0 %v512_v28  ;;  %908 = vmatprep.subr.mxu1 %v640_v29  ;;  %v587_v26 = vld [vmem:[#allocation8 + $0x650] sm:$0xff]  ;;  %v584_v28 = vld [vmem:[#allocation8 + $0x638] sm:$0xff] }
 0x167   :  { %838 = vmatpush2.msra.mxu0 %v511_v30  ;;  %909 = vmatpush2.msra.mxu1 %v639_v31  ;;  %v455_v29 = vld [vmem:[#allocation8 + $0x230] sm:$0xff]  ;;  %v452_v31 = vld [vmem:[#allocation8 + $0x218] sm:$0xff] }
 0x168   :  { %839 = vmatprep.subr.mxu0 %v508_v32  ;;  %910 = vmatprep.subr.mxu1 %v636_v33  ;;  %v583_v30 = vld [vmem:[#allocation8 + $0x630] sm:$0xff]  ;;  %v580_v32 = vld [vmem:[#allocation8 + $0x618] sm:$0xff] }
 0x169   :  { %840 = vmatpush2.msra.mxu0 %v507_v34  ;;  %911 = vmatpush2.msra.mxu1 %v635_v35  ;;  %v451_v33 = vld [vmem:[#allocation8 + $0x210] sm:$0xff]  ;;  %v982_v35 = vld [vmem:[#allocation10 + $0xf8] sm:$0xff] }
 0x16a   :  { %841 = vmatprep.subr.mxu0 %v504_v36  ;;  %912 = vmatprep.subr.mxu1 %v632_v37  ;;  %v579_v34 = vld [vmem:[#allocation8 + $0x610] sm:$0xff]  ;;  %v980_v37 = vld [vmem:[#allocation10 + $0xe8] sm:$0xff] }
 0x16b   :  { %842 = vmatpush2.msra.mxu0 %v503_v38  ;;  %913 = vmatpush2.msra.mxu1 %v631_v39  ;;  %v981_v36 = vld [vmem:[#allocation10 + $0xf0] sm:$0xff]  ;;  %v979_v38 = vld [vmem:[#allocation10 + $0xe0] sm:$0xff]  ;;  %v978_v39 = vld [vmem:[#allocation10 + $0xd8] sm:$0xff] }
 0x16c   :  { %843 = vmatprep.subr.mxu0 %v500_v40  ;;  %914 = vmatprep.subr.mxu1 %v628_v41  ;;  %v977_v40 = vld [vmem:[#allocation10 + $0xd0] sm:$0xff]  ;;  %v976_v41 = vld [vmem:[#allocation10 + $0xc8] sm:$0xff] }
 0x16d   :  { %844 = vmatpush2.msra.mxu0 %v499_v42  ;;  %915 = vmatpush2.msra.mxu1 %v627_v43  ;;  %v975_v42 = vld [vmem:[#allocation10 + $0xc0] sm:$0xff]  ;;  %v974_v43 = vld [vmem:[#allocation10 + $0xb8] sm:$0xff] }
 0x16e   :  { %845 = vmatprep.subr.mxu0 %v496_v44  ;;  %916 = vmatprep.subr.mxu1 %v624_v45  ;;  %v973_v44 = vld [vmem:[#allocation10 + $0xb0] sm:$0xff]  ;;  %v972_v45 = vld [vmem:[#allocation10 + $0xa8] sm:$0xff] }
 0x16f   :  { %846 = vmatpush2.msra.mxu0 %v495_v46  ;;  %917 = vmatpush2.msra.mxu1 %v623_v47  ;;  %v969_v46 = vld [vmem:[#allocation10 + $0x90] sm:$0xff]  ;;  %v968_v47 = vld [vmem:[#allocation10 + $0x88] sm:$0xff] }
 0x170   :  { %847 = vmatprep.subr.mxu0 %v492_v48  ;;  %918 = vmatprep.subr.mxu1 %v620_v49  ;;  %v967_v48 = vld [vmem:[#allocation10 + $0x80] sm:$0xff]  ;;  %v966_v49 = vld [vmem:[#allocation10 + $0x78] sm:$0xff] }
 0x171   :  { %848 = vmatpush2.msra.mxu0 %v491_v50  ;;  %919 = vmatpush2.msra.mxu1 %v619_v51  ;;  %v965_v50 = vld [vmem:[#allocation10 + $0x70] sm:$0xff]  ;;  %v964_v51 = vld [vmem:[#allocation10 + $0x68] sm:$0xff] }
 0x172   :  { %849 = vmatprep.subr.mxu0 %v488_v52  ;;  %920 = vmatprep.subr.mxu1 %v616_v53  ;;  %v963_v52 = vld [vmem:[#allocation10 + $0x60] sm:$0xff]  ;;  %v962_v53 = vld [vmem:[#allocation10 + $0x58] sm:$0xff] }
 0x173   :  { %850 = vmatpush2.msra.mxu0 %v487_v54  ;;  %921 = vmatpush2.msra.mxu1 %v615_v55  ;;  %v961_v54 = vld [vmem:[#allocation10 + $0x50] sm:$0xff]  ;;  %v960_v55 = vld [vmem:[#allocation10 + $0x48] sm:$0xff] }
 0x174   :  { %851 = vmatprep.subr.mxu0 %v484_v56  ;;  %922 = vmatprep.subr.mxu1 %v612_v57  ;;  %v959_v56 = vld [vmem:[#allocation10 + $0x40] sm:$0xff]  ;;  %v1046_v57 = vld [vmem:[#allocation10 + $0x2f8] sm:$0xff] }
 0x175   :  { %852 = vmatpush2.msra.mxu0 %v483_v58  ;;  %923 = vmatpush2.msra.mxu1 %v611_v59  ;;  %v1045_v58 = vld [vmem:[#allocation10 + $0x2f0] sm:$0xff]  ;;  %v1044_v59 = vld [vmem:[#allocation10 + $0x2e8] sm:$0xff] }
 0x176   :  { %853 = vmatprep.subr.mxu0 %v480_v60  ;;  %924 = vmatprep.subr.mxu1 %v608_v61  ;;  %v1043_v60 = vld [vmem:[#allocation10 + $0x2e0] sm:$0xff]  ;;  %v958_v61 = vld [vmem:[#allocation10 + $0x38] sm:$0xff] }
 0x177   :  { %854 = vmatpush2.msra.mxu0 %v479_v62  ;;  %925 = vmatpush2.msra.mxu1 %v607_v63  ;;  %v1042_v62 = vld [vmem:[#allocation10 + $0x2d8] sm:$0xff]  ;;  %v957_v63 = vld [vmem:[#allocation10 + $0x30] sm:$0xff] }
 0x178   :  { %855 = vmatprep.subr.mxu0 %v476_v0  ;;  %926 = vmatprep.subr.mxu1 %v604_v1  ;;  %v1041_v0 = vld [vmem:[#allocation10 + $0x2d0] sm:$0xff]  ;;  %v956_v1 = vld [vmem:[#allocation10 + $0x28] sm:$0xff] }
 0x179   :  { %856 = vmatpush2.msra.mxu0 %v475_v2  ;;  %927 = vmatpush2.msra.mxu1 %v603_v3  ;;  %v1040_v2 = vld [vmem:[#allocation10 + $0x2c8] sm:$0xff]  ;;  %v955_v3 = vld [vmem:[#allocation10 + $0x20] sm:$0xff] }
 0x17a   :  { %857 = vmatprep.subr.mxu0 %v472_v4  ;;  %928 = vmatprep.subr.mxu1 %v600_v10  ;;  %v1039_v4 = vld [vmem:[#allocation10 + $0x2c0] sm:$0xff]  ;;  %v954_v10 = vld [vmem:[#allocation10 + $0x18] sm:$0xff] }
 0x17b   :  { %858 = vmatpush2.msra.mxu0 %v471_v11  ;;  %929 = vmatpush2.msra.mxu1 %v599_v12  ;;  %v1038_v11 = vld [vmem:[#allocation10 + $0x2b8] sm:$0xff]  ;;  %v953_v12 = vld [vmem:[#allocation10 + $0x10] sm:$0xff] }
 0x17c   :  { %859 = vmatprep.subr.mxu0 %v468_v13  ;;  %930 = vmatprep.subr.mxu1 %v596_v14  ;;  %v1037_v13 = vld [vmem:[#allocation10 + $0x2b0] sm:$0xff]  ;;  %v952_v14 = vld [vmem:[#allocation10 + $0x8] sm:$0xff] }
 0x17d   :  { %860 = vmatpush2.msra.mxu0 %v467_v15  ;;  %931 = vmatpush2.msra.mxu1 %v595_v16  ;;  %v1036_v15 = vld [vmem:[#allocation10 + $0x2a8] sm:$0xff]  ;;  %v951_v16 = vld [vmem:[#allocation10] sm:$0xff] }
 0x17e   :  { %861 = vmatprep.subr.mxu0 %v464_v18  ;;  %932 = vmatprep.subr.mxu1 %v592_v19  ;;  %v1035_v18 = vld [vmem:[#allocation10 + $0x2a0] sm:$0xff]  ;;  %v1014_v19 = vld [vmem:[#allocation10 + $0x1f8] sm:$0xff] }
 0x17f   :  { %862 = vmatpush2.msra.mxu0 %v463_v20  ;;  %933 = vmatpush2.msra.mxu1 %v591_v21  ;;  %v1034_v20 = vld [vmem:[#allocation10 + $0x298] sm:$0xff]  ;;  %v1013_v21 = vld [vmem:[#allocation10 + $0x1f0] sm:$0xff] }
 0x180   :  { %863 = vmatprep.subr.mxu0 %v460_v23  ;;  %934 = vmatprep.subr.mxu1 %v588_v24  ;;  %v1033_v23 = vld [vmem:[#allocation10 + $0x290] sm:$0xff]  ;;  %v1012_v24 = vld [vmem:[#allocation10 + $0x1e8] sm:$0xff] }
 0x181   :  { %864 = vmatpush2.msra.mxu0 %v459_v25  ;;  %935 = vmatpush2.msra.mxu1 %v587_v26  ;;  %v1032_v25 = vld [vmem:[#allocation10 + $0x288] sm:$0xff]  ;;  %v1011_v26 = vld [vmem:[#allocation10 + $0x1e0] sm:$0xff] }
 0x182   :  { %865 = vmatprep.subr.mxu0 %v456_v27  ;;  %936 = vmatprep.subr.mxu1 %v584_v28  ;;  %v1031_v27 = vld [vmem:[#allocation10 + $0x280] sm:$0xff]  ;;  %v1010_v28 = vld [vmem:[#allocation10 + $0x1d8] sm:$0xff] }
 0x183   :  { %866 = vmatpush2.msra.mxu0 %v455_v29  ;;  %937 = vmatpush2.msra.mxu1 %v583_v30  ;;  %v1030_v29 = vld [vmem:[#allocation10 + $0x278] sm:$0xff]  ;;  %v1009_v30 = vld [vmem:[#allocation10 + $0x1d0] sm:$0xff] }
 0x184   :  { %867 = vmatprep.subr.mxu0 %v452_v31  ;;  %938 = vmatprep.subr.mxu1 %v580_v32  ;;  %v1029_v31 = vld [vmem:[#allocation10 + $0x270] sm:$0xff]  ;;  %v1008_v32 = vld [vmem:[#allocation10 + $0x1c8] sm:$0xff] }
 0x185   :  { %868 = vmatpush2.msra.mxu0 %v451_v33  ;;  %939 = vmatpush2.msra.mxu1 %v579_v34  ;;  %v1028_v33 = vld [vmem:[#allocation10 + $0x268] sm:$0xff]  ;;  %v1007_v34 = vld [vmem:[#allocation10 + $0x1c0] sm:$0xff] }
 0x186   :  { %870 = vmatmul.mubr.f32.vlgmr.msra.gmra.mxu0 %v1481_v22  ;;  %941 = vmatmul.mubr.f32.vlgmr.msra.gmra.mxu1 %v1479_v17  ;;  %v971_v22 = vld [vmem:[#allocation10 + $0xa0] sm:$0xff]  ;;  %v970_v17 = vld [vmem:[#allocation10 + $0x98] sm:$0xff] }
 0x187   :  { %1091 = vmatprep.subr.mxu0 %v982_v35  ;;  %1162 = vmatprep.subr.mxu1 %v1046_v57  ;;  %v1027_v35 = vld [vmem:[#allocation10 + $0x260] sm:$0xff] }
 0x188   :  { %1092 = vmatpush1.msra.mxu0 %v981_v36  ;;  %1163 = vmatpush1.msra.mxu1 %v1045_v58  ;;  %v1006_v36 = vld [vmem:[#allocation10 + $0x1b8] sm:$0xff]  ;;  %v1015_v57 = vld [vmem:[#allocation10 + $0x200] sm:$0xff] }
 0x189   :  { %1093 = vmatprep.subr.mxu0 %v980_v37  ;;  %1164 = vmatprep.subr.mxu1 %v1044_v59  ;;  %v1026_v37 = vld [vmem:[#allocation10 + $0x258] sm:$0xff] }
 0x18a   :  { %1094 = vmatpush1.msra.mxu0 %v979_v38  ;;  %1165 = vmatpush1.msra.mxu1 %v1043_v60  ;;  %v1005_v38 = vld [vmem:[#allocation10 + $0x1b0] sm:$0xff]  ;;  %v994_v58 = vld [vmem:[#allocation10 + $0x158] sm:$0xff] }
 0x18b   :  { %1095 = vmatprep.subr.mxu0 %v978_v39  ;;  %1166 = vmatprep.subr.mxu1 %v1042_v62  ;;  %v1025_v39 = vld [vmem:[#allocation10 + $0x250] sm:$0xff]  ;;  %v1078_v59 = vld [vmem:[#allocation10 + $0x3f8] sm:$0xff]  ;;  %v992_v62 = vld [vmem:[#allocation10 + $0x148] sm:$0xff] }
 0x18c   :  { %1096 = vmatpush1.msra.mxu0 %v977_v40  ;;  %1167 = vmatpush1.msra.mxu1 %v1041_v0  ;;  %v1004_v40 = vld [vmem:[#allocation10 + $0x1a8] sm:$0xff]  ;;  %v993_v60 = vld [vmem:[#allocation10 + $0x150] sm:$0xff]  ;;  %v991_v0 = vld [vmem:[#allocation10 + $0x140] sm:$0xff] }
 0x18d   :  { %1097 = vmatprep.subr.mxu0 %v976_v41  ;;  %1168 = vmatprep.subr.mxu1 %v1040_v2  ;;  %v1024_v41 = vld [vmem:[#allocation10 + $0x248] sm:$0xff]  ;;  %v990_v2 = vld [vmem:[#allocation10 + $0x138] sm:$0xff] }
 0x18e   :  { %1098 = vmatpush1.msra.mxu0 %v975_v42  ;;  %1169 = vmatpush1.msra.mxu1 %v1039_v4  ;;  %v1003_v42 = vld [vmem:[#allocation10 + $0x1a0] sm:$0xff]  ;;  %v989_v4 = vld [vmem:[#allocation10 + $0x130] sm:$0xff] }
 0x18f   :  { %1099 = vmatprep.subr.mxu0 %v974_v43  ;;  %1170 = vmatprep.subr.mxu1 %v1038_v11  ;;  %v1023_v43 = vld [vmem:[#allocation10 + $0x240] sm:$0xff]  ;;  %v988_v11 = vld [vmem:[#allocation10 + $0x128] sm:$0xff] }
 0x190   :  { %1100 = vmatpush1.msra.mxu0 %v973_v44  ;;  %1171 = vmatpush1.msra.mxu1 %v1037_v13  ;;  %v1002_v44 = vld [vmem:[#allocation10 + $0x198] sm:$0xff]  ;;  %v987_v13 = vld [vmem:[#allocation10 + $0x120] sm:$0xff] }
 0x191   :  { %1101 = vmatprep.subr.mxu0 %v972_v45  ;;  %1172 = vmatprep.subr.mxu1 %v1036_v15  ;;  %v1022_v45 = vld [vmem:[#allocation10 + $0x238] sm:$0xff] }
 0x192   :  { %1102 = vmatpush1.msra.mxu0 %v971_v22  ;;  %1173 = vmatpush1.msra.mxu1 %v1035_v18  ;;  %v1001_v22 = vld [vmem:[#allocation10 + $0x190] sm:$0xff]  ;;  %v986_v15 = vld [vmem:[#allocation10 + $0x118] sm:$0xff] }
 0x193   :  { %1103 = vmatprep.subr.mxu0 %v970_v17  ;;  %1174 = vmatprep.subr.mxu1 %v1034_v20  ;;  %v1021_v17 = vld [vmem:[#allocation10 + $0x230] sm:$0xff]  ;;  %v984_v20 = vld [vmem:[#allocation10 + $0x108] sm:$0xff] }
 0x194   :  { %1104 = vmatpush1.msra.mxu0 %v969_v46  ;;  %1175 = vmatpush1.msra.mxu1 %v1033_v23  ;;  %v1000_v46 = vld [vmem:[#allocation10 + $0x188] sm:$0xff]  ;;  %v985_v18 = vld [vmem:[#allocation10 + $0x110] sm:$0xff] }
 0x195   :  { %1105 = vmatprep.subr.mxu0 %v968_v47  ;;  %1176 = vmatprep.subr.mxu1 %v1032_v25  ;;  %v1020_v47 = vld [vmem:[#allocation10 + $0x228] sm:$0xff]  ;;  %v1066_v25 = vld [vmem:[#allocation10 + $0x398] sm:$0xff] }
 0x196   :  { %1106 = vmatpush1.msra.mxu0 %v967_v48  ;;  %1177 = vmatpush1.msra.mxu1 %v1031_v27  ;;  %v999_v48 = vld [vmem:[#allocation10 + $0x180] sm:$0xff]  ;;  %v1068_v23 = vld [vmem:[#allocation10 + $0x3a8] sm:$0xff] }
 0x197   :  { %1107 = vmatprep.subr.mxu0 %v966_v49  ;;  %1178 = vmatprep.subr.mxu1 %v1030_v29  ;;  %v1019_v49 = vld [vmem:[#allocation10 + $0x220] sm:$0xff]  ;;  %v1064_v27 = vld [vmem:[#allocation10 + $0x388] sm:$0xff]  ;;  %v1062_v29 = vld [vmem:[#allocation10 + $0x378] sm:$0xff] }
 0x198   :  { %1108 = vmatpush1.msra.mxu0 %v965_v50  ;;  %1179 = vmatpush1.msra.mxu1 %v1029_v31  ;;  %v998_v50 = vld [vmem:[#allocation10 + $0x178] sm:$0xff]  ;;  %v1060_v31 = vld [vmem:[#allocation10 + $0x368] sm:$0xff] }
 0x199   :  { %1109 = vmatprep.subr.mxu0 %v964_v51  ;;  %1180 = vmatprep.subr.mxu1 %v1028_v33  ;;  %v1018_v51 = vld [vmem:[#allocation10 + $0x218] sm:$0xff] }
 0x19a   :  { %1110 = vmatpush1.msra.mxu0 %v963_v52  ;;  %1181 = vmatpush1.msra.mxu1 %v1027_v35  ;;  %v997_v52 = vld [vmem:[#allocation10 + $0x170] sm:$0xff]  ;;  %v1058_v33 = vld [vmem:[#allocation10 + $0x358] sm:$0xff]  ;;  %v1056_v35 = vld [vmem:[#allocation10 + $0x348] sm:$0xff] }
 0x19b   :  { %1111 = vmatprep.subr.mxu0 %v962_v53  ;;  %1182 = vmatprep.subr.mxu1 %v1026_v37  ;;  %v1017_v53 = vld [vmem:[#allocation10 + $0x210] sm:$0xff]  ;;  %v1054_v37 = vld [vmem:[#allocation10 + $0x338] sm:$0xff] }
 0x19c   :  { %1112 = vmatpush1.msra.mxu0 %v961_v54  ;;  %1183 = vmatpush1.msra.mxu1 %v1025_v39  ;;  %v996_v54 = vld [vmem:[#allocation10 + $0x168] sm:$0xff] }
 0x19d   :  { %1113 = vmatprep.subr.mxu0 %v960_v55  ;;  %1184 = vmatprep.subr.mxu1 %v1024_v41  ;;  %v1016_v55 = vld [vmem:[#allocation10 + $0x208] sm:$0xff]  ;;  %v1050_v41 = vld [vmem:[#allocation10 + $0x318] sm:$0xff] }
 0x19e   :  { %1114 = vmatpush1.msra.mxu0 %v959_v56  ;;  %1185 = vmatpush1.msra.mxu1 %v1023_v43  ;;  %v995_v56 = vld [vmem:[#allocation10 + $0x160] sm:$0xff]  ;;  %v1052_v39 = vld [vmem:[#allocation10 + $0x328] sm:$0xff] }
 0x19f   :  { %1115 = vmatprep.subr.mxu0 %v958_v61  ;;  %1186 = vmatprep.subr.mxu1 %v1022_v45  ;;  %v1077_v61 = vld [vmem:[#allocation10 + $0x3f0] sm:$0xff]  ;;  %v1048_v43 = vld [vmem:[#allocation10 + $0x308] sm:$0xff] }
 0x1a0   :  { %1116 = vmatpush1.msra.mxu0 %v957_v63  ;;  %1187 = vmatpush1.msra.mxu1 %v1021_v17  ;;  %v1076_v63 = vld [vmem:[#allocation10 + $0x3e8] sm:$0xff] }
 0x1a1   :  { %1117 = vmatprep.subr.mxu0 %v956_v1  ;;  %1188 = vmatprep.subr.mxu1 %v1020_v47  ;;  %v1075_v1 = vld [vmem:[#allocation10 + $0x3e0] sm:$0xff]  ;;  %v641_v45 = vld [vmem:[%s1508_s4] sm:$0xf] }
 0x1a2   :  { %1118 = vmatpush1.msra.mxu0 %v955_v3  ;;  %1189 = vmatpush1.msra.mxu1 %v1019_v49  ;;  %v1074_v3 = vld [vmem:[#allocation10 + $0x3d8] sm:$0xff]  ;;  %v650_v17 = vrot.slane %v641_v45, %v1467_v7 }
 0x1a3   :  { %1119 = vmatprep.subr.mxu0 %v954_v10  ;;  %1190 = vmatprep.subr.mxu1 %v1018_v51  ;;  %v1073_v10 = vld [vmem:[#allocation10 + $0x3d0] sm:$0xff] }
 0x1a4   :  { %1120 = vmatpush1.msra.mxu0 %v953_v12  ;;  %1191 = vmatpush1.msra.mxu1 %v1017_v53  ;;  %v1072_v12 = vld [vmem:[#allocation10 + $0x3c8] sm:$0xff] }
 0x1a5   :  { %1121 = vmatprep.subr.mxu0 %v952_v14  ;;  %1192 = vmatprep.subr.mxu1 %v1016_v55  ;;  %v1071_v14 = vld [vmem:[#allocation10 + $0x3c0] sm:$0xff] }
 0x1a6   :  { %1122 = vmatpush1.msra.mxu0 %v951_v16  ;;  %1193 = vmatpush1.msra.mxu1 %v1015_v57  ;;  %v1070_v16 = vld [vmem:[#allocation10 + $0x3b8] sm:$0xff]  ;;  %v658_v57 = vrot.slane %v641_v45, %v237_v8 }
 0x1a7   :  { %1123 = vmatprep.subr.mxu0 %v1014_v19  ;;  %1194 = vmatprep.subr.mxu1 %v1078_v59  ;;  %v1069_v19 = vld [vmem:[#allocation10 + $0x3b0] sm:$0xff] }
 0x1a8   :  { %1124 = vmatpush2.msra.mxu0 %v1013_v21  ;;  %1195 = vmatpush2.msra.mxu1 %v1077_v61  ;;  %v983_v21 = vld [vmem:[#allocation10 + $0x100] sm:$0xff] }
 0x1a9   :  { %1125 = vmatprep.subr.mxu0 %v1012_v24  ;;  %1196 = vmatprep.subr.mxu1 %v1076_v63  ;;  %v1067_v24 = vld [vmem:[#allocation10 + $0x3a0] sm:$0xff] }
 0x1aa   :  { %1126 = vmatpush2.msra.mxu0 %v1011_v26  ;;  %1197 = vmatpush2.msra.mxu1 %v1075_v1  ;;  %v1065_v26 = vld [vmem:[#allocation10 + $0x390] sm:$0xff] }
 0x1ab   :  { %1127 = vmatprep.subr.mxu0 %v1010_v28  ;;  %1198 = vmatprep.subr.mxu1 %v1074_v3  ;;  %v1063_v28 = vld [vmem:[#allocation10 + $0x380] sm:$0xff] }
 0x1ac   :  { %1128 = vmatpush2.msra.mxu0 %v1009_v30  ;;  %1199 = vmatpush2.msra.mxu1 %v1073_v10  ;;  %v1061_v30 = vld [vmem:[#allocation10 + $0x370] sm:$0xff] }
 0x1ad   :  { %1129 = vmatprep.subr.mxu0 %v1008_v32  ;;  %1200 = vmatprep.subr.mxu1 %v1072_v12  ;;  %v1059_v32 = vld [vmem:[#allocation10 + $0x360] sm:$0xff] }
 0x1ae   :  { %1130 = vmatpush2.msra.mxu0 %v1007_v34  ;;  %1201 = vmatpush2.msra.mxu1 %v1071_v14  ;;  %v1057_v34 = vld [vmem:[#allocation10 + $0x350] sm:$0xff] }
 0x1af   :  { %1131 = vmatprep.subr.mxu0 %v1006_v36  ;;  %1202 = vmatprep.subr.mxu1 %v1070_v16  ;;  %v1055_v36 = vld [vmem:[#allocation10 + $0x340] sm:$0xff] }
 0x1b0   :  { %1132 = vmatpush2.msra.mxu0 %v1005_v38  ;;  %1203 = vmatpush2.msra.mxu1 %v1069_v19  ;;  %v1053_v38 = vld [vmem:[#allocation10 + $0x330] sm:$0xff] }
 0x1b1   :  { %1133 = vmatprep.subr.mxu0 %v1004_v40  ;;  %1204 = vmatprep.subr.mxu1 %v1068_v23  ;;  %v1051_v40 = vld [vmem:[#allocation10 + $0x320] sm:$0xff] }
 0x1b2   :  { %1134 = vmatpush2.msra.mxu0 %v1003_v42  ;;  %1205 = vmatpush2.msra.mxu1 %v1067_v24  ;;  %v1049_v42 = vld [vmem:[#allocation10 + $0x310] sm:$0xff] }
 0x1b3   :  { %1135 = vmatprep.subr.mxu0 %v1002_v44  ;;  %1206 = vmatprep.subr.mxu1 %v1066_v25  ;;  %v1047_v44 = vld [vmem:[#allocation10 + $0x300] sm:$0xff] }
 0x1b4   :  { %1136 = vmatpush2.msra.mxu0 %v1001_v22  ;;  %1207 = vmatpush2.msra.mxu1 %v1065_v26  ;;  %v646_v22 = vrot.slane %v641_v45, %v1471_v9 }
 0x1b5   :  { %1137 = vmatprep.subr.mxu0 %v1000_v46  ;;  %1208 = vmatprep.subr.mxu1 %v1064_v27 }
 0x1b6   :  { %1138 = vmatpush2.msra.mxu0 %v999_v48  ;;  %1209 = vmatpush2.msra.mxu1 %v1063_v28 }
 0x1b7   :  { %1139 = vmatprep.subr.mxu0 %v998_v50  ;;  %1210 = vmatprep.subr.mxu1 %v1062_v29 }
 0x1b8   :  { %1140 = vmatpush2.msra.mxu0 %v997_v52  ;;  %1211 = vmatpush2.msra.mxu1 %v1061_v30 }
 0x1b9   :  { %1141 = vmatprep.subr.mxu0 %v996_v54  ;;  %1212 = vmatprep.subr.mxu1 %v1060_v31 }
 0x1ba   :  { %1142 = vmatpush2.msra.mxu0 %v995_v56  ;;  %1213 = vmatpush2.msra.mxu1 %v1059_v32  ;;  %v654_v56 = vrot.slane %v641_v45, %v233_v6  ;;  %v1079_v6 = vld [vmem:[%s1510_s6] sm:$0x3] }
 0x1bb   :  { %1143 = vmatprep.subr.mxu0 %v994_v58  ;;  %1214 = vmatprep.subr.mxu1 %v1058_v33  ;;  %v1084_v8 = vrot.slane %v1079_v6, %v1471_v9 }
 0x1bc   :  { %1144 = vmatpush2.msra.mxu0 %v993_v60  ;;  %1215 = vmatpush2.msra.mxu1 %v1057_v34 }
 0x1bd   :  { %1145 = vmatprep.subr.mxu0 %v992_v62  ;;  %1216 = vmatprep.subr.mxu1 %v1056_v35 }
 0x1be   :  { %1146 = vmatpush2.msra.mxu0 %v991_v0  ;;  %1217 = vmatpush2.msra.mxu1 %v1055_v36 }
 0x1bf   :  { %1147 = vmatprep.subr.mxu0 %v990_v2  ;;  %1218 = vmatprep.subr.mxu1 %v1054_v37 }
 0x1c0   :  { %1148 = vmatpush2.msra.mxu0 %v989_v4  ;;  %1219 = vmatpush2.msra.mxu1 %v1053_v38  ;;  %v1088_v4 = vrot.slane %v1079_v6, %v1467_v7 }
 0x1c1   :  { %1149 = vmatprep.subr.mxu0 %v988_v11  ;;  %1220 = vmatprep.subr.mxu1 %v1052_v39 }
 0x1c2   :  { %1150 = vmatpush2.msra.mxu0 %v987_v13  ;;  %1221 = vmatpush2.msra.mxu1 %v1051_v40 }
 0x1c3   :  { %1151 = vmatprep.subr.mxu0 %v986_v15  ;;  %1222 = vmatprep.subr.mxu1 %v1050_v41 }
 0x1c4   :  { %1152 = vmatpush2.msra.mxu0 %v985_v18  ;;  %1223 = vmatpush2.msra.mxu1 %v1049_v42 }
 0x1c5   :  { %1153 = vmatprep.subr.mxu0 %v984_v20  ;;  %1224 = vmatprep.subr.mxu1 %v1048_v43 }
 0x1c6   :  { %1154 = vmatpush2.msra.mxu0 %v983_v21  ;;  %1225 = vmatpush2.msra.mxu1 %v1047_v44 }
 0x205   :  { %v729_v46 = vpop.f32.mrf.mxu0  ;;  %v800_v47 = vpop.f32.mrf.mxu1 }
 0x206   :  { %v730_v48 = vadd.f32 %v729_v46, %v646_v22 }
 0x207   :  { %v731_v49 = vpop.f32.mrf.mxu0  ;;  %v802_v52 = vpop.f32.mrf.mxu1 }
 0x208   :  { %v732_v50 = vadd.f32 %v731_v49, %v650_v17  ;;  %v801_v51 = vadd.f32 %v800_v47, %v730_v48 }
 0x20a   :  { %v803_v53 = vadd.f32 %v802_v52, %v732_v50 }
 0x20c   :  { %1262 = vtanh.f32 %v803_v53 }
 0x20d   :  { %1264 = vtanh.f32 %v801_v51 }
 0x219   :  { %v1263_v54 = vpop.eup %1262 }
 0x21a   :  { %v1265_v55 = vpop.eup %1264  ;;  %1155 = vmatprep.mubr.f32.mxu0 %v1263_v54 }
 0x21b   :  { %1156 = vmatmul.mubr.f32.vlgmr.msra.gmra.mxu0 %v1265_v55 }
 0x246   :  { %v871_v58 = vpop.f32.mrf.mxu0  ;;  %v942_v59 = vpop.f32.mrf.mxu1 }
 0x247   :  { %v872_v60 = vadd.f32 %v871_v58, %v654_v56 }
 0x248   :  { %v873_v61 = vpop.f32.mrf.mxu0  ;;  %v944_v0 = vpop.f32.mrf.mxu1 }
 0x249   :  { %v874_v62 = vadd.f32 %v873_v61, %v658_v57  ;;  %v943_v63 = vadd.f32 %v942_v59, %v872_v60 }
 0x24b   :  { %v945_v1 = vadd.f32 %v944_v0, %v874_v62 }
 0x24d   :  { %1266 = vtanh.f32 %v945_v1 }
 0x24e   :  { %1268 = vtanh.f32 %v943_v63 }
 0x25a   :  { %v1267_v2 = vpop.eup %1266 }
 0x25b   :  { %v1269_v3 = vpop.eup %1268  ;;  %1226 = vmatprep.mubr.f32.mxu1 %v1267_v2 }
 0x25c   :  { %1227 = vmatmul.mubr.f32.vlgmr.msra.gmra.mxu1 %v1269_v3 }
 0x2db   :  { %v1157_v5 = vpop.f32.mrf.mxu0 }
 0x2dc   :  { %v1158_v11 = vadd.f32 %v1157_v5, %v1084_v8 }
 0x2dd   :  { %v1159_v10 = vpop.f32.mrf.mxu0 }
 0x2de   :  { %v1160_v13 = vadd.f32 %v1159_v10, %v1088_v4 }
 0x31c   :  { %v1228_v12 = vpop.f32.mrf.mxu1 }
 0x31d   :  { %v1229_v14 = vadd.f32 %v1228_v12, %v1158_v11 }
 0x31e   :  { %v1230_v15 = vpop.f32.mrf.mxu1 }
 0x31f   :  { %1233 = vst [vmem:[#allocation11] sm:$0xff] %v1229_v14  ;;  %v1231_v16 = vadd.f32 %v1230_v15, %v1160_v13 }
 0x321   :  { %1234 = vst [vmem:[#allocation11 + $0x8] sm:$0xff] %v1231_v16 }
 0x322   :  { %1381 = shalt.err (!%p1378_p1)
}
 0x323   :  { %1244 = dma.vmem_to_hbm [thread:$0]  %s1242_s29, 256, %s1511_s7, [#allocation4]  }
 0x324   :  { %1396 = dma.done.wait [#allocation4], 256  }
 0x325   :  { %1397 = vsyncadd [#allocation4], 4294967040 }
 0x326   :  { %1248 = vsyncpa [#allocation3], 1 }
 0x327   :  { %1249 = vsyncpa [#allocation6], 1 }
 0x328   :  { %1250 = vsyncpa [#allocation9], 1 }
 0x329   :  { %1251 = vsyncpa [#allocation4], 1 }

</bundles_post_ra>
